<compile_context>
chip_gen: v5e
topology: v5e:2x2
jax: 0.10.0
libtpu: 0.0.40
codegen_flags: <defaults>
</compile_context>

<pallas_src>
import jax
import jax.numpy as jnp
from jax import lax
from jax.experimental import pallas as pl
from jax.experimental.pallas import tpu as pltpu

# ---- problem sizes (small, deterministic) -----------------------------------
K = 3                      # number of parameter sets: 1 pretrained + 2 task vectors
PRIOR = 0.3                # cfg.sam_retraining = False  ->  prior = 0.3
B, C, H, W = 2, 4, 16, 16  # NCHW input
IN_DIM = C * H * W         # 1024
HIDDEN = 128               # encoder output dim (feature dim)
NUM_CLASSES = 16           # classification head output dim


# ---- fused Pallas kernel -----------------------------------------------------

def fused_kernel(lam_ref,              # SMEM  (K,)                  scalar-prefetched lambdas
                 x_ref,                # VMEM  (Bp, IN_DIM)  f32     flattened input
                 w_ref,                # VMEM  (K, HIDDEN, IN_DIM) bf16  encoder weight stack
                 b_ref,                # VMEM  (K, 1, HIDDEN) f32    encoder bias stack
                 hw_ref,               # VMEM  (NUM_CLASSES, HIDDEN) bf16 head weight
                 hb_ref,               # VMEM  (1, NUM_CLASSES) f32  head bias
                 o_ref):               # VMEM  (Bp, NUM_CLASSES) f32 output
    # ---- merge: W = sum_k lambda_k * W_k,  b = sum_k lambda_k * b_k ----------
    # Static unroll over K=3; bf16 weights upcast once (DMA'd as bf16, so HBM
    # traffic is halved; the cast + FMA are a trivial VPU pass on VMEM data).
    merged_w = lam_ref[0] * w_ref[0].astype(jnp.float32)      # (HIDDEN, IN_DIM) f32
    merged_b = lam_ref[0] * b_ref[0]                           # (1, HIDDEN)      f32
    for k in range(1, K):
        merged_w = merged_w + lam_ref[k] * w_ref[k].astype(jnp.float32)
        merged_b = merged_b + lam_ref[k] * b_ref[k]

    # ---- encoder: feature = x @ merged_W.T + merged_b  (MXU, f32 acc) --------
    feat = lax.dot_general(
        x_ref[...], merged_w,
        dimension_numbers=(((1,), (1,)), ((), ())),            # NT: no transpose
        preferred_element_type=jnp.float32) + merged_b          # (Bp, HIDDEN)

    # ---- classification head: out = feature @ head_W.T + head_b --------------
    out = lax.dot_general(
        feat, hw_ref[...].astype(jnp.float32),
        dimension_numbers=(((1,), (1,)), ((), ())),
        preferred_element_type=jnp.float32)                     # (Bp, NUM_CLASSES)
    o_ref[...] = (out + hb_ref[...]).astype(o_ref.dtype)


# ---- wrappers ----------------------------------------------------------------

def compute_lambdas(lambdas_raw):
    """lambdas(): clamp task lambdas to [0,1], prepend pretrain lambda 1.0 -> (K,)."""
    pretrain_lambdas = jnp.ones((1, 1), jnp.float32)
    task_lambdas = jnp.clip(lambdas_raw, 0.0, 1.0)
    lambdass = jnp.concatenate([pretrain_lambdas, task_lambdas], axis=1)  # (1, K)
    return lambdass[0]                                                    # (K,)


def adamerging_forward(x_nchw, lambdas_raw, enc_w_stack, enc_b_stack,
                       head_w, head_b):
    lam = compute_lambdas(lambdas_raw)                       # (K,)  -> SMEM prefetch

    bx = x_nchw.shape[0]
    x_flat = x_nchw.reshape(bx, -1)                          # torch .view(B, -1)
    pad = (-bx) % 8                                          # sublane-aligned batch
    x_pad = jnp.pad(x_flat, ((0, pad), (0, 0)))
    bp = x_pad.shape[0]

    # bf16 weight streaming: halves the dominant HBM bytes; accumulation stays f32.
    enc_w_bf16 = enc_w_stack.astype(jnp.bfloat16)            # (K, HIDDEN, IN_DIM)
    head_w_bf16 = head_w.astype(jnp.bfloat16)                # (NUM_CLASSES, HIDDEN)
    b_stack3 = enc_b_stack.reshape(K, 1, HIDDEN)
    head_b2d = head_b.reshape(1, NUM_CLASSES)

    out_pad = pl.pallas_call(
        fused_kernel,
        out_shape=jax.ShapeDtypeStruct((bp, NUM_CLASSES), jnp.float32),
        grid_spec=pltpu.PrefetchScalarGridSpec(
            num_scalar_prefetch=1,                           # lam -> SMEM scalars
            grid=(1,),                                       # single fused step
            in_specs=[
                pl.BlockSpec((bp, IN_DIM), lambda i, lam: (0, 0)),
                pl.BlockSpec((K, HIDDEN, IN_DIM), lambda i, lam: (0, 0, 0)),
                pl.BlockSpec((K, 1, HIDDEN), lambda i, lam: (0, 0, 0)),
                pl.BlockSpec((NUM_CLASSES, HIDDEN), lambda i, lam: (0, 0)),
                pl.BlockSpec((1, NUM_CLASSES), lambda i, lam: (0, 0)),
            ],
            out_specs=pl.BlockSpec((bp, NUM_CLASSES), lambda i, lam: (0, 0)),
        ),
        compiler_params=pltpu.CompilerParams(
            dimension_semantics=("arbitrary",)),
    )(lam, x_pad, enc_w_bf16, b_stack3, head_w_bf16, head_b2d)

    return out_pad[:bx]


# ---- main --------------------------------------------------------------------

if __name__ == "__main__":
    key = jax.random.PRNGKey(0)
    k_x, k_w, k_b, k_hw, k_hb = jax.random.split(key, 5)

    # deterministic synthetic parameters (paramslist: K sets of encoder params)
    x = jax.random.normal(k_x, (B, C, H, W), jnp.float32)
    enc_w_stack = jax.random.normal(k_w, (K, HIDDEN, IN_DIM), jnp.float32) * 0.02
    enc_b_stack = jax.random.normal(k_b, (K, HIDDEN), jnp.float32) * 0.02
    head_w = jax.random.normal(k_hw, (NUM_CLASSES, HIDDEN), jnp.float32) * 0.02
    head_b = jax.random.normal(k_hb, (NUM_CLASSES,), jnp.float32) * 0.02

    # trainable lambdas_raw, initialised exactly as in __init__ (ones * prior)
    lambdas_raw = jnp.ones((1, K - 1), jnp.float32) * PRIOR

    out = adamerging_forward(x, lambdas_raw, enc_w_stack, enc_b_stack,
                             head_w, head_b)
    out = jax.block_until_ready(out)

    # pure-JAX reference (merge weights first, then two Linears), with the same
    # bf16 rounding applied to the weights for an apples-to-apples check.
    alph = jnp.concatenate([jnp.ones((1, 1)), jnp.clip(lambdas_raw, 0., 1.)], 1)[0]
    w_bf = enc_w_stack.astype(jnp.bfloat16).astype(jnp.float32)
    hw_bf = head_w.astype(jnp.bfloat16).astype(jnp.float32)
    w_merged = jnp.einsum("k,kij->ij", alph, w_bf)
    b_merged = jnp.einsum("k,ki->i", alph, enc_b_stack)
    feat_ref = jnp.matmul(x.reshape(B, -1), w_merged.T,
                          precision=jax.lax.Precision.HIGHEST) + b_merged
    out_ref = jnp.matmul(feat_ref, hw_bf.T,
                         precision=jax.lax.Precision.HIGHEST) + head_b

    assert out.shape == (B, NUM_CLASSES)
    assert jnp.allclose(out, out_ref, atol=2e-3, rtol=2e-3)
    print("KERNEL_OK")
</pallas_src>

<mosaic_0001>
module attributes {stable_mosaic.version = 11 : i64} {
  func.func @fused_kernel(%arg0: i32, %arg1: memref<3xf32, #tpu.memory_space<smem>>, %arg2: memref<8x1024xf32, #tpu.memory_space<vmem>>, %arg3: memref<3x128x1024xbf16, #tpu.memory_space<vmem>>, %arg4: memref<3x1x128xf32, #tpu.memory_space<vmem>>, %arg5: memref<16x128xbf16, #tpu.memory_space<vmem>>, %arg6: memref<1x16xf32, #tpu.memory_space<vmem>>, %arg7: memref<8x16xf32, #tpu.memory_space<vmem>>) attributes {dimension_semantics = [#tpu.dimension_semantics<arbitrary>], iteration_bounds = array<i64: 1>, scalar_prefetch = 1 : i64, scratch_operands = 0 : i64, tpu.core_type = #tpu.core_type<tc>, window_params = [{pipeline_mode = #tpu.pipeline_mode<synchronous>, transform_indices = @transform_0, window_bounds = array<i64: 8, 1024>}, {pipeline_mode = #tpu.pipeline_mode<synchronous>, transform_indices = @transform_1, window_bounds = array<i64: 3, 128, 1024>}, {pipeline_mode = #tpu.pipeline_mode<synchronous>, transform_indices = @transform_2, window_bounds = array<i64: 3, 1, 128>}, {pipeline_mode = #tpu.pipeline_mode<synchronous>, transform_indices = @transform_3, window_bounds = array<i64: 16, 128>}, {pipeline_mode = #tpu.pipeline_mode<synchronous>, transform_indices = @transform_4, window_bounds = array<i64: 1, 16>}, {pipeline_mode = #tpu.pipeline_mode<synchronous>, transform_indices = @transform_5, window_bounds = array<i64: 8, 16>}]} {
    %c0 = arith.constant 0 : index
    %0 = memref.load %arg1[%c0] : memref<3xf32, #tpu.memory_space<smem>>
    %c0_0 = arith.constant 0 : index
    %c0_1 = arith.constant 0 : index
    %c0_2 = arith.constant 0 : index
    %1 = vector.load %arg3[%c0_0, %c0_1, %c0_2] : memref<3x128x1024xbf16, #tpu.memory_space<vmem>>, vector<1x128x1024xbf16>
    %2 = vector.shape_cast %1 : vector<1x128x1024xbf16> to vector<128x1024xbf16>
    %3 = arith.extf %2 : vector<128x1024xbf16> to vector<128x1024xf32>
    %4 = vector.broadcast %0 : f32 to vector<128x1024xf32>
    %5 = arith.mulf %4, %3 : vector<128x1024xf32>
    %c0_3 = arith.constant 0 : index
    %6 = memref.load %arg1[%c0_3] : memref<3xf32, #tpu.memory_space<smem>>
    %c0_4 = arith.constant 0 : index
    %c0_5 = arith.constant 0 : index
    %c0_6 = arith.constant 0 : index
    %7 = vector.load %arg4[%c0_4, %c0_5, %c0_6] : memref<3x1x128xf32, #tpu.memory_space<vmem>>, vector<1x1x128xf32>
    %8 = vector.shape_cast %7 : vector<1x1x128xf32> to vector<1x128xf32>
    %9 = vector.broadcast %6 : f32 to vector<1x128xf32>
    %10 = arith.mulf %9, %8 : vector<1x128xf32>
    %c1 = arith.constant 1 : index
    %11 = memref.load %arg1[%c1] : memref<3xf32, #tpu.memory_space<smem>>
    %c1_7 = arith.constant 1 : index
    %c0_8 = arith.constant 0 : index
    %c0_9 = arith.constant 0 : index
    %12 = vector.load %arg3[%c1_7, %c0_8, %c0_9] : memref<3x128x1024xbf16, #tpu.memory_space<vmem>>, vector<1x128x1024xbf16>
    %13 = vector.shape_cast %12 : vector<1x128x1024xbf16> to vector<128x1024xbf16>
    %14 = arith.extf %13 : vector<128x1024xbf16> to vector<128x1024xf32>
    %15 = vector.broadcast %11 : f32 to vector<128x1024xf32>
    %16 = arith.mulf %15, %14 : vector<128x1024xf32>
    %17 = arith.addf %5, %16 : vector<128x1024xf32>
    %c1_10 = arith.constant 1 : index
    %18 = memref.load %arg1[%c1_10] : memref<3xf32, #tpu.memory_space<smem>>
    %c1_11 = arith.constant 1 : index
    %c0_12 = arith.constant 0 : index
    %c0_13 = arith.constant 0 : index
    %19 = vector.load %arg4[%c1_11, %c0_12, %c0_13] : memref<3x1x128xf32, #tpu.memory_space<vmem>>, vector<1x1x128xf32>
    %20 = vector.shape_cast %19 : vector<1x1x128xf32> to vector<1x128xf32>
    %21 = vector.broadcast %18 : f32 to vector<1x128xf32>
    %22 = arith.mulf %21, %20 : vector<1x128xf32>
    %23 = arith.addf %10, %22 : vector<1x128xf32>
    %c2 = arith.constant 2 : index
    %24 = memref.load %arg1[%c2] : memref<3xf32, #tpu.memory_space<smem>>
    %c2_14 = arith.constant 2 : index
    %c0_15 = arith.constant 0 : index
    %c0_16 = arith.constant 0 : index
    %25 = vector.load %arg3[%c2_14, %c0_15, %c0_16] : memref<3x128x1024xbf16, #tpu.memory_space<vmem>>, vector<1x128x1024xbf16>
    %26 = vector.shape_cast %25 : vector<1x128x1024xbf16> to vector<128x1024xbf16>
    %27 = arith.extf %26 : vector<128x1024xbf16> to vector<128x1024xf32>
    %28 = vector.broadcast %24 : f32 to vector<128x1024xf32>
    %29 = arith.mulf %28, %27 : vector<128x1024xf32>
    %30 = arith.addf %17, %29 : vector<128x1024xf32>
    %c2_17 = arith.constant 2 : index
    %31 = memref.load %arg1[%c2_17] : memref<3xf32, #tpu.memory_space<smem>>
    %c2_18 = arith.constant 2 : index
    %c0_19 = arith.constant 0 : index
    %c0_20 = arith.constant 0 : index
    %32 = vector.load %arg4[%c2_18, %c0_19, %c0_20] : memref<3x1x128xf32, #tpu.memory_space<vmem>>, vector<1x1x128xf32>
    %33 = vector.shape_cast %32 : vector<1x1x128xf32> to vector<1x128xf32>
    %34 = vector.broadcast %31 : f32 to vector<1x128xf32>
    %35 = arith.mulf %34, %33 : vector<1x128xf32>
    %36 = arith.addf %23, %35 : vector<1x128xf32>
    %c0_21 = arith.constant 0 : index
    %c0_22 = arith.constant 0 : index
    %37 = vector.load %arg2[%c0_21, %c0_22] : memref<8x1024xf32, #tpu.memory_space<vmem>>, vector<8x1024xf32>
    %cst = arith.constant dense<0.000000e+00> : vector<8x128xf32>
    %38 = tpu.matmul %37, %30, %cst {dimension_numbers = #tpu.dot_dimension_numbers<[1], [1], [0], [0], [0, 0, 1, 0], [], []>} : vector<8x1024xf32>, vector<128x1024xf32>, vector<8x128xf32> -> vector<8x128xf32>
    %39 = vector.broadcast %36 : vector<1x128xf32> to vector<8x128xf32>
    %40 = arith.addf %38, %39 : vector<8x128xf32>
    %c0_23 = arith.constant 0 : index
    %c0_24 = arith.constant 0 : index
    %41 = vector.load %arg5[%c0_23, %c0_24] : memref<16x128xbf16, #tpu.memory_space<vmem>>, vector<16x128xbf16>
    %42 = arith.extf %41 : vector<16x128xbf16> to vector<16x128xf32>
    %cst_25 = arith.constant dense<0.000000e+00> : vector<8x16xf32>
    %43 = tpu.matmul %40, %42, %cst_25 {dimension_numbers = #tpu.dot_dimension_numbers<[1], [1], [0], [0], [0, 0, 1, 0], [], []>} : vector<8x128xf32>, vector<16x128xf32>, vector<8x16xf32> -> vector<8x16xf32>
    %c0_26 = arith.constant 0 : index
    %c0_27 = arith.constant 0 : index
    %44 = vector.load %arg6[%c0_26, %c0_27] : memref<1x16xf32, #tpu.memory_space<vmem>>, vector<1x16xf32>
    %45 = vector.broadcast %44 : vector<1x16xf32> to vector<8x16xf32>
    %46 = arith.addf %43, %45 : vector<8x16xf32>
    %c0_28 = arith.constant 0 : index
    %c0_29 = arith.constant 0 : index
    %47 = vector.load %arg7[%c0_28, %c0_29] : memref<8x16xf32, #tpu.memory_space<vmem>>, vector<8x16xf32>
    tpu.vector_store %arg7[%c0_28, %c0_29], %46 {strides = array<i32>} : memref<8x16xf32, #tpu.memory_space<vmem>>, vector<8x16xf32>,
    return
  }
  func.func @transform_0(%arg0: i32, %arg1: memref<3xf32, #tpu.memory_space<smem>>) -> (i32, i32) {
    %c0_i32 = arith.constant 0 : i32
    %c0_i32_0 = arith.constant 0 : i32
    %c0_i32_1 = arith.constant 0 : i32
    return %c0_i32, %c0_i32_0 : i32, i32
  }
  func.func @transform_1(%arg0: i32, %arg1: memref<3xf32, #tpu.memory_space<smem>>) -> (i32, i32, i32) {
    %c0_i32 = arith.constant 0 : i32
    %c0_i32_0 = arith.constant 0 : i32
    %c0_i32_1 = arith.constant 0 : i32
    %c0_i32_2 = arith.constant 0 : i32
    return %c0_i32, %c0_i32_0, %c0_i32_1 : i32, i32, i32
  }
  func.func @transform_2(%arg0: i32, %arg1: memref<3xf32, #tpu.memory_space<smem>>) -> (i32, i32, i32) {
    %c0_i32 = arith.constant 0 : i32
    %c0_i32_0 = arith.constant 0 : i32
    %c0_i32_1 = arith.constant 0 : i32
    %c0_i32_2 = arith.constant 0 : i32
    return %c0_i32, %c0_i32_0, %c0_i32_1 : i32, i32, i32
  }
  func.func @transform_3(%arg0: i32, %arg1: memref<3xf32, #tpu.memory_space<smem>>) -> (i32, i32) {
    %c0_i32 = arith.constant 0 : i32
    %c0_i32_0 = arith.constant 0 : i32
    %c0_i32_1 = arith.constant 0 : i32
    return %c0_i32, %c0_i32_0 : i32, i32
  }
  func.func @transform_4(%arg0: i32, %arg1: memref<3xf32, #tpu.memory_space<smem>>) -> (i32, i32) {
    %c0_i32 = arith.constant 0 : i32
    %c0_i32_0 = arith.constant 0 : i32
    %c0_i32_1 = arith.constant 0 : i32
    return %c0_i32, %c0_i32_0 : i32, i32
  }
  func.func @transform_5(%arg0: i32, %arg1: memref<3xf32, #tpu.memory_space<smem>>) -> (i32, i32) {
    %c0_i32 = arith.constant 0 : i32
    %c0_i32_0 = arith.constant 0 : i32
    %c0_i32_1 = arith.constant 0 : i32
    return %c0_i32, %c0_i32_0 : i32, i32
  }
}

</mosaic_0001>

<bundles_post_ra>
// kernel: tpu_custom_call.1
= control target key start
LH: loop header
LB: loop body
LE: loop exit
PB: predicated region body
PF: predicated region fallthrough
CT: control target
= control target key end

     0   :  { %s1706_s24 = smov [#allocation3]   ;;  %s2191_s0 = inlined_call_operand.hbm [shape: f32[3], index: 0, kind: input, shape index: {}]   ;;  %s2192_s1 = inlined_call_operand.hbm [shape: f32[8,1024], index: 1, kind: input, shape index: {}]   ;;  %s2193_s2 = inlined_call_operand.hbm [shape: bf16[3,128,1024], index: 2, kind: input, shape index: {}]   ;;  %s2194_s3 = inlined_call_operand.hbm [shape: f32[3,1,128], index: 3, kind: input, shape index: {}]   ;;  %s2195_s4 = inlined_call_operand.hbm [shape: bf16[16,128], index: 4, kind: input, shape index: {}]   ;;  %s2196_s5 = inlined_call_operand.vmem [shape: f32[1,16], index: 5, kind: input, shape index: {}]   ;;  %s2197_s6 = inlined_call_operand.hbm [shape: f32[8,16], index: 6, kind: output, shape index: {}]  }
   0x1   :  { %s12_s23 = sshll.u32 %s2191_s0, 4  ;;  %s13_s23 = int_to_ptr.hbm [resolvable:$true] %s12_s23 }
   0x2   :  { %15 = dma.hbm_to_smem %s13_s23, 16, %s1706_s24, [#allocation2] }
   0x3   :  { %1696 = dma.done.wait [#allocation2], 16 }
   0x4   :  { %1697 = vsyncadd [#allocation2], 4294967280 }
   0x5   :  { %18 = sfence }
   0x6   :  { %19 = vsyncpa [#allocation5], 0 }
   0x7   :  { %20 = vsyncpa [#allocation8], 0 }
   0x8   :  { %21 = vsyncpa [#allocation11], 0  ;;  %s38_s27 = sshll.u32 %s2193_s2, 4  ;;  %s39_s27 = int_to_ptr.hbm [resolvable:$true] %s38_s27 }
   0x9   :  { %22 = vsyncpa [#allocation6], 0  ;;  %s1707_s28 = smov [#allocation7]   ;;  %s28_s7 = sshll.u32 %s2192_s1, 4  ;;  %s29_s7 = int_to_ptr.hbm [resolvable:$true] %s28_s7 }
   0xa   :  { %s40_s29 = sshll.u32 %s1707_s28, 4  ;;  %s1708_s8 = smov 512   ;;  %s41_s29 = int_to_ptr.vmem [resolvable:$true] %s40_s29 }
   0xb   :  { %s1709_s9 = smov 32   ;;  %s1710_s10 = smov [#allocation4]  }
   0xc   :  { %46 = dma.hbm_to_vmem [thread:$0]  %s39_s27, 24576, %s41_s29, [#allocation8], %s1708_s8, %s1708_s8, %s1709_s9  }
   0xd   :  { %s30_s11 = sshll.u32 %s1710_s10, 4  ;;  %s51_s14 = sshll.u32 %s2194_s3, 4  ;;  %s31_s11 = int_to_ptr.vmem [resolvable:$true] %s30_s11  ;;  %s52_s14 = int_to_ptr.hbm [resolvable:$true] %s51_s14 }
   0xe   :  { %33 = dma.hbm_to_vmem [thread:$0]  %s29_s7, 1024, %s31_s11, [#allocation5]  }
   0xf   :  { %s1711_s2 = smov [#allocation9]   ;;  %s64_s1 = sshll.u32 %s2195_s4, 4  ;;  %s65_s1 = int_to_ptr.hbm [resolvable:$true] %s64_s1 }
  0x10   :  { %s53_s15 = sshll.u32 %s1711_s2, 4  ;;  %s1712_s18 = smov 16   ;;  %s54_s15 = int_to_ptr.vmem [resolvable:$true] %s53_s15 }
  0x11   :  { %s1713_s19 = smov 1   ;;  %s1714_s20 = smov [#allocation10]  }
  0x12   :  { %59 = dma.hbm_to_vmem [thread:$0]  %s52_s14, 48, %s54_s15, [#allocation8], %s1712_s18, %s1712_s18, %s1713_s19  }
  0x13   :  { %s66_s21 = sshll.u32 %s1714_s20, 4  ;;  %s1715_s22 = smov 64   ;;  %s67_s21 = int_to_ptr.vmem [resolvable:$true] %s66_s21 }
  0x14   :  { %s1716_s23 = smov 4  }
  0x15   :  { %72 = dma.hbm_to_vmem [thread:$0]  %s65_s1, 128, %s67_s21, [#allocation11], %s1715_s22, %s1715_s22, %s1716_s23  }
  0x16   :  { %1698 = dma.done.wait [#allocation5], 1024  }
  0x17   :  { %1699 = vsyncadd [#allocation5], 4294966272 }
  0x18   :  { %1700 = dma.done.wait [#allocation8], 24624  }
  0x19   :  { %1701 = vsyncadd [#allocation8], 4294942672 }
  0x1a   :  { %1702 = dma.done.wait [#allocation11], 128  }
  0x1b   :  { %1703 = vsyncadd [#allocation11], 4294967168  ;;  %s91_s3 = sld [smem:[#allocation3]]  ;;  %v153_v0 = vld [vmem:[#allocation7 + $0x1e8] sm:$0xff]  ;;  %v152_v8 = vld [vmem:[#allocation7 + $0x1e0] sm:$0xff]  ;;  %s1717_s27 = smov [#allocation12]  }
  0x1c   :  { %s1545_s24 = sld [smem:[#allocation3 + $0x1]]  ;;  %v478_v2 = vld [vmem:[#allocation7 + $0x3e8] sm:$0xff]  ;;  %v278_v4 = vunpack.c.l.bf16 %v153_v0  ;;  %v477_v9 = vld [vmem:[#allocation7 + $0x3e0] sm:$0xff]  ;;  %v276_v12 = vunpack.c.l.bf16 %v152_v8  ;;  %v279_v18 = vunpack.c.h.bf16 %v153_v0  ;;  %v277_v27 = vunpack.c.h.bf16 %v152_v8  ;;  %s1531_s28 = sshll.u32 %s1717_s27, 4  ;;  %s1532_s28 = int_to_ptr.vmem [resolvable:$true] %s1531_s28 }
  0x1d   :  { %s1546_s25 = sld [smem:[#allocation3 + $0x2]]  ;;  %v933_v3 = vld [vmem:[#allocation7 + $0x5e8] sm:$0xff]  ;;  %v603_v5 = vunpack.c.l.bf16 %v478_v2  ;;  %v932_v10 = vld [vmem:[#allocation7 + $0x5e0] sm:$0xff]  ;;  %v601_v13 = vunpack.c.l.bf16 %v477_v9  ;;  %v604_v22 = vunpack.c.h.bf16 %v478_v2  ;;  %v602_v30 = vunpack.c.h.bf16 %v477_v9  ;;  %s1533_s0 = sshll.u32 %s2197_s6, 4  ;;  %s1534_s0 = int_to_ptr.hbm [resolvable:$true] %s1533_s0 }
  0x1e   :  { %v1058_v7 = vunpack.c.l.bf16 %v933_v3  ;;  %v1056_v14 = vunpack.c.l.bf16 %v932_v10  ;;  %v149_v23 = vld [vmem:[#allocation7 + $0x1c8] sm:$0xff]  ;;  %v1059_v26 = vunpack.c.h.bf16 %v933_v3  ;;  %v1057_v31 = vunpack.c.h.bf16 %v932_v10  ;;  %v148_v34 = vld [vmem:[#allocation7 + $0x1c0] sm:$0xff] }
  0x1f   :  { %v474_v32 = vld [vmem:[#allocation7 + $0x3c8] sm:$0xff]  ;;  %v270_v38 = vunpack.c.l.bf16 %v149_v23  ;;  %v473_v39 = vld [vmem:[#allocation7 + $0x3c0] sm:$0xff]  ;;  %v268_v48 = vunpack.c.l.bf16 %v148_v34  ;;  %v271_v56 = vunpack.c.h.bf16 %v149_v23  ;;  %v269_v2 = vunpack.c.h.bf16 %v148_v34 }
  0x20   :  { %v929_v33 = vld [vmem:[#allocation7 + $0x5c8] sm:$0xff]  ;;  %v928_v40 = vld [vmem:[#allocation7 + $0x5c0] sm:$0xff]  ;;  %v595_v46 = vunpack.c.l.bf16 %v474_v32  ;;  %v593_v51 = vunpack.c.l.bf16 %v473_v39  ;;  %v596_v60 = vunpack.c.h.bf16 %v474_v32  ;;  %vm1524_vm0 = vcmask 130048  }
  0x21   :  { %v1768_v1 = vstv %s91_s3  ;;  %v1050_v47 = vunpack.c.l.bf16 %v929_v33  ;;  %v1048_v52 = vunpack.c.l.bf16 %v928_v40  ;;  %v145_v61 = vld [vmem:[#allocation7 + $0x1a8] sm:$0xff]  ;;  %v1051_v0 = vunpack.c.h.bf16 %v929_v33  ;;  %v144_v10 = vld [vmem:[#allocation7 + $0x1a0] sm:$0xff] }
  0x22   :  { %v1770_v6 = vstv %s1545_s24  ;;  %v407_v15 = vmul.f32 %v1768_v1, %v278_v4  ;;  %v405_v19 = vmul.f32 %v1768_v1, %v276_v12  ;;  %v408_v25 = vmul.f32 %v1768_v1, %v279_v18  ;;  %v470_v8 = vld [vmem:[#allocation7 + $0x3a8] sm:$0xff] }
  0x23   :  { %v1772_v11 = vstv %s1546_s25  ;;  %v732_v16 = vmul.f32 %v1770_v6, %v603_v5  ;;  %v730_v20 = vmul.f32 %v1770_v6, %v601_v13  ;;  %v733_v29 = vmul.f32 %v1770_v6, %v604_v22  ;;  %v925_v9 = vld [vmem:[#allocation7 + $0x5a8] sm:$0xff] }
  0x24   :  { %v1187_v17 = vmul.f32 %v1772_v11, %v1058_v7  ;;  %v1185_v21 = vmul.f32 %v1772_v11, %v1056_v14  ;;  %v1188_v36 = vmul.f32 %v1772_v11, %v1059_v26  ;;  %v406_v37 = vmul.f32 %v1768_v1, %v277_v27 }
  0x25   :  { %v860_v24 = vadd.f32 %v732_v16, %v407_v15  ;;  %v858_v28 = vadd.f32 %v730_v20, %v405_v19  ;;  %v861_v42 = vadd.f32 %v733_v29, %v408_v25  ;;  %v731_v43 = vmul.f32 %v1770_v6, %v602_v30  ;;  %v469_v16 = vld [vmem:[#allocation7 + $0x3a0] sm:$0xff] }
  0x26   :  { %v1186_v44 = vmul.f32 %v1772_v11, %v1057_v31  ;;  %v399_v45 = vmul.f32 %v1768_v1, %v270_v38  ;;  %v724_v53 = vmul.f32 %v1770_v6, %v595_v46  ;;  %v1179_v54 = vmul.f32 %v1772_v11, %v1050_v47  ;;  %v141_v38 = vld [vmem:[#allocation7 + $0x188] sm:$0xff] }
  0x27   :  { %v1315_v35 = vadd.f32 %v1187_v17, %v860_v24  ;;  %v1313_v41 = vadd.f32 %v1185_v21, %v858_v28  ;;  %v1316_v49 = vadd.f32 %v1188_v36, %v861_v42  ;;  %v859_v50 = vadd.f32 %v731_v43, %v406_v37  ;;  %v924_v17 = vld [vmem:[#allocation7 + $0x5a0] sm:$0xff]  ;;  %v466_v47 = vld [vmem:[#allocation7 + $0x388] sm:$0xff] }
  0x28   :  { %v397_v55 = vmul.f32 %v1768_v1, %v268_v48  ;;  %v722_v58 = vmul.f32 %v1770_v6, %v593_v51  ;;  %v1177_v59 = vmul.f32 %v1772_v11, %v1048_v52  ;;  %v852_v62 = vadd.f32 %v724_v53, %v399_v45  ;;  %v921_v48 = vld [vmem:[#allocation7 + $0x588] sm:$0xff] }
  0x29   :  { %1376 = vmatpush.xpose.msra.mxu2 %v1315_v35  ;;  %1336 = vmatpush.xpose.msra.mxu0 %v1313_v41  ;;  %v1314_v57 = vadd.f32 %v1186_v44, %v859_v50  ;;  %v400_v63 = vmul.f32 %v1768_v1, %v271_v56  ;;  %v725_v4 = vmul.f32 %v1770_v6, %v596_v60  ;;  %v594_v5 = vunpack.c.h.bf16 %v473_v39 }
  0x2a   :  { %1396 = vmatpush.xpose.msra.mxu3 %v1316_v49  ;;  %v850_v3 = vadd.f32 %v722_v58, %v397_v55  ;;  %v1049_v7 = vunpack.c.h.bf16 %v928_v40  ;;  %v1307_v12 = vadd.f32 %v1179_v54, %v852_v62  ;;  %v1180_v13 = vmul.f32 %v1772_v11, %v1051_v0  ;;  %v140_v49 = vld [vmem:[#allocation7 + $0x180] sm:$0xff] }
  0x2b   :  { %1356 = vmatpush.xpose.msra.mxu1 %v1314_v57  ;;  %v398_v14 = vmul.f32 %v1768_v1, %v269_v2  ;;  %v262_v15 = vunpack.c.l.bf16 %v145_v61  ;;  %v853_v19 = vadd.f32 %v725_v4, %v400_v63  ;;  %v723_v20 = vmul.f32 %v1770_v6, %v594_v5  ;;  %v465_v54 = vld [vmem:[#allocation7 + $0x380] sm:$0xff] }
  0x2c   :  { %v1305_v18 = vadd.f32 %v1177_v59, %v850_v3  ;;  %v1178_v21 = vmul.f32 %v1772_v11, %v1049_v7  ;;  %v587_v23 = vunpack.c.l.bf16 %v470_v8  ;;  %v1042_v24 = vunpack.c.l.bf16 %v925_v9  ;;  %v920_v55 = vld [vmem:[#allocation7 + $0x580] sm:$0xff] }
  0x2d   :  { %1377 = vmatpush.xpose.msra.mxu2 %v1307_v12  ;;  %v391_v22 = vmul.f32 %v1768_v1, %v262_v15  ;;  %v260_v25 = vunpack.c.l.bf16 %v144_v10  ;;  %v1308_v26 = vadd.f32 %v1180_v13, %v853_v19  ;;  %v851_v27 = vadd.f32 %v723_v20, %v398_v14  ;;  %v137_v15 = vld [vmem:[#allocation7 + $0x168] sm:$0xff] }
  0x2e   :  { %1337 = vmatpush.xpose.msra.mxu0 %v1305_v18  ;;  %v585_v28 = vunpack.c.l.bf16 %v469_v16  ;;  %v1040_v29 = vunpack.c.l.bf16 %v924_v17  ;;  %v716_v30 = vmul.f32 %v1770_v6, %v587_v23  ;;  %v1171_v31 = vmul.f32 %v1772_v11, %v1042_v24  ;;  %v462_v24 = vld [vmem:[#allocation7 + $0x368] sm:$0xff] }
  0x2f   :  { %v389_v32 = vmul.f32 %v1768_v1, %v260_v25  ;;  %v263_v33 = vunpack.c.h.bf16 %v145_v61  ;;  %1397 = vmatpush.xpose.msra.mxu3 %v1308_v26  ;;  %v1306_v34 = vadd.f32 %v1178_v21, %v851_v27  ;;  %v588_v37 = vunpack.c.h.bf16 %v470_v8  ;;  %v917_v25 = vld [vmem:[#allocation7 + $0x568] sm:$0xff]  ;;  %v136_v26 = vld [vmem:[#allocation7 + $0x160] sm:$0xff] }
  0x30   :  { %v714_v35 = vmul.f32 %v1770_v6, %v585_v28  ;;  %v1169_v36 = vmul.f32 %v1772_v11, %v1040_v29  ;;  %v844_v39 = vadd.f32 %v716_v30, %v391_v22  ;;  %v1043_v41 = vunpack.c.h.bf16 %v925_v9 }
  0x31   :  { %v392_v40 = vmul.f32 %v1768_v1, %v263_v33  ;;  %v261_v42 = vunpack.c.h.bf16 %v144_v10  ;;  %1357 = vmatpush.xpose.msra.mxu1 %v1306_v34  ;;  %v717_v44 = vmul.f32 %v1770_v6, %v588_v37  ;;  %v586_v45 = vunpack.c.h.bf16 %v469_v16 }
  0x32   :  { %v842_v43 = vadd.f32 %v714_v35, %v389_v32  ;;  %v1041_v46 = vunpack.c.h.bf16 %v924_v17  ;;  %v1299_v50 = vadd.f32 %v1171_v31, %v844_v39  ;;  %v1172_v51 = vmul.f32 %v1772_v11, %v1043_v41  ;;  %v461_v31 = vld [vmem:[#allocation7 + $0x360] sm:$0xff] }
  0x33   :  { %v390_v52 = vmul.f32 %v1768_v1, %v261_v42  ;;  %v254_v53 = vunpack.c.l.bf16 %v141_v38  ;;  %v845_v57 = vadd.f32 %v717_v44, %v392_v40  ;;  %v715_v58 = vmul.f32 %v1770_v6, %v586_v45  ;;  %v916_v32 = vld [vmem:[#allocation7 + $0x560] sm:$0xff] }
  0x34   :  { %v1297_v56 = vadd.f32 %v1169_v36, %v842_v43  ;;  %v1170_v59 = vmul.f32 %v1772_v11, %v1041_v46  ;;  %1378 = vmatpush.xpose.msra.mxu2 %v1299_v50  ;;  %v579_v61 = vunpack.c.l.bf16 %v466_v47  ;;  %v1034_v62 = vunpack.c.l.bf16 %v921_v48 }
  0x35   :  { %v383_v60 = vmul.f32 %v1768_v1, %v254_v53  ;;  %v252_v63 = vunpack.c.l.bf16 %v140_v49  ;;  %v1300_v0 = vadd.f32 %v1172_v51, %v845_v57  ;;  %v843_v2 = vadd.f32 %v715_v58, %v390_v52  ;;  %v133_v53 = vld [vmem:[#allocation7 + $0x148] sm:$0xff] }
  0x36   :  { %1338 = vmatpush.xpose.msra.mxu0 %v1297_v56  ;;  %v577_v3 = vunpack.c.l.bf16 %v465_v54  ;;  %v1032_v4 = vunpack.c.l.bf16 %v920_v55  ;;  %v708_v5 = vmul.f32 %v1770_v6, %v579_v61  ;;  %v1163_v7 = vmul.f32 %v1772_v11, %v1034_v62  ;;  %v458_v62 = vld [vmem:[#allocation7 + $0x348] sm:$0xff] }
  0x37   :  { %v381_v8 = vmul.f32 %v1768_v1, %v252_v63  ;;  %v255_v9 = vunpack.c.h.bf16 %v141_v38  ;;  %1398 = vmatpush.xpose.msra.mxu3 %v1300_v0  ;;  %v1298_v10 = vadd.f32 %v1170_v59, %v843_v2  ;;  %v580_v14 = vunpack.c.h.bf16 %v466_v47  ;;  %v913_v63 = vld [vmem:[#allocation7 + $0x548] sm:$0xff]  ;;  %v132_v0 = vld [vmem:[#allocation7 + $0x140] sm:$0xff] }
  0x38   :  { %v706_v12 = vmul.f32 %v1770_v6, %v577_v3  ;;  %v1161_v13 = vmul.f32 %v1772_v11, %v1032_v4  ;;  %v836_v16 = vadd.f32 %v708_v5, %v383_v60  ;;  %v1035_v18 = vunpack.c.h.bf16 %v921_v48 }
  0x39   :  { %v384_v17 = vmul.f32 %v1768_v1, %v255_v9  ;;  %v253_v19 = vunpack.c.h.bf16 %v140_v49  ;;  %1358 = vmatpush.xpose.msra.mxu1 %v1298_v10  ;;  %v709_v21 = vmul.f32 %v1770_v6, %v580_v14  ;;  %v578_v22 = vunpack.c.h.bf16 %v465_v54 }
  0x3a   :  { %v834_v20 = vadd.f32 %v706_v12, %v381_v8  ;;  %v1033_v23 = vunpack.c.h.bf16 %v920_v55  ;;  %v1291_v27 = vadd.f32 %v1163_v7, %v836_v16  ;;  %v1164_v28 = vmul.f32 %v1772_v11, %v1035_v18  ;;  %v457_v7 = vld [vmem:[#allocation7 + $0x340] sm:$0xff] }
  0x3b   :  { %v382_v29 = vmul.f32 %v1768_v1, %v253_v19  ;;  %v246_v30 = vunpack.c.l.bf16 %v137_v15  ;;  %v837_v34 = vadd.f32 %v709_v21, %v384_v17  ;;  %v707_v35 = vmul.f32 %v1770_v6, %v578_v22  ;;  %v912_v8 = vld [vmem:[#allocation7 + $0x540] sm:$0xff] }
  0x3c   :  { %v1289_v33 = vadd.f32 %v1161_v13, %v834_v20  ;;  %v1162_v36 = vmul.f32 %v1772_v11, %v1033_v23  ;;  %1379 = vmatpush.xpose.msra.mxu2 %v1291_v27  ;;  %v571_v38 = vunpack.c.l.bf16 %v462_v24  ;;  %v1026_v39 = vunpack.c.l.bf16 %v917_v25 }
  0x3d   :  { %v375_v37 = vmul.f32 %v1768_v1, %v246_v30  ;;  %v244_v40 = vunpack.c.l.bf16 %v136_v26  ;;  %v1292_v41 = vadd.f32 %v1164_v28, %v837_v34  ;;  %v835_v42 = vadd.f32 %v707_v35, %v382_v29  ;;  %v129_v30 = vld [vmem:[#allocation7 + $0x128] sm:$0xff] }
  0x3e   :  { %1339 = vmatpush.xpose.msra.mxu0 %v1289_v33  ;;  %v569_v43 = vunpack.c.l.bf16 %v461_v31  ;;  %v1024_v44 = vunpack.c.l.bf16 %v916_v32  ;;  %v700_v45 = vmul.f32 %v1770_v6, %v571_v38  ;;  %v1155_v46 = vmul.f32 %v1772_v11, %v1026_v39  ;;  %v454_v39 = vld [vmem:[#allocation7 + $0x328] sm:$0xff] }
  0x3f   :  { %v373_v47 = vmul.f32 %v1768_v1, %v244_v40  ;;  %v247_v48 = vunpack.c.h.bf16 %v137_v15  ;;  %1399 = vmatpush.xpose.msra.mxu3 %v1292_v41  ;;  %v1290_v49 = vadd.f32 %v1162_v36, %v835_v42  ;;  %v572_v52 = vunpack.c.h.bf16 %v462_v24  ;;  %v909_v40 = vld [vmem:[#allocation7 + $0x528] sm:$0xff]  ;;  %v128_v41 = vld [vmem:[#allocation7 + $0x120] sm:$0xff] }
  0x40   :  { %v698_v50 = vmul.f32 %v1770_v6, %v569_v43  ;;  %v1153_v51 = vmul.f32 %v1772_v11, %v1024_v44  ;;  %v828_v54 = vadd.f32 %v700_v45, %v375_v37  ;;  %v1027_v56 = vunpack.c.h.bf16 %v917_v25 }
  0x41   :  { %v376_v55 = vmul.f32 %v1768_v1, %v247_v48  ;;  %v245_v57 = vunpack.c.h.bf16 %v136_v26  ;;  %1359 = vmatpush.xpose.msra.mxu1 %v1290_v49  ;;  %v701_v59 = vmul.f32 %v1770_v6, %v572_v52  ;;  %v570_v60 = vunpack.c.h.bf16 %v461_v31 }
  0x42   :  { %v826_v58 = vadd.f32 %v698_v50, %v373_v47  ;;  %v1025_v61 = vunpack.c.h.bf16 %v916_v32  ;;  %v1283_v2 = vadd.f32 %v1155_v46, %v828_v54  ;;  %v1156_v3 = vmul.f32 %v1772_v11, %v1027_v56  ;;  %v453_v46 = vld [vmem:[#allocation7 + $0x320] sm:$0xff] }
  0x43   :  { %v374_v4 = vmul.f32 %v1768_v1, %v245_v57  ;;  %v238_v5 = vunpack.c.l.bf16 %v133_v53  ;;  %v829_v10 = vadd.f32 %v701_v59, %v376_v55  ;;  %v699_v12 = vmul.f32 %v1770_v6, %v570_v60  ;;  %v908_v47 = vld [vmem:[#allocation7 + $0x520] sm:$0xff] }
  0x44   :  { %v1281_v9 = vadd.f32 %v1153_v51, %v826_v58  ;;  %v1154_v13 = vmul.f32 %v1772_v11, %v1025_v61  ;;  %1380 = vmatpush.xpose.msra.mxu2 %v1283_v2  ;;  %v563_v15 = vunpack.c.l.bf16 %v458_v62  ;;  %v1018_v16 = vunpack.c.l.bf16 %v913_v63 }
  0x45   :  { %v367_v14 = vmul.f32 %v1768_v1, %v238_v5  ;;  %v236_v17 = vunpack.c.l.bf16 %v132_v0  ;;  %v1284_v18 = vadd.f32 %v1156_v3, %v829_v10  ;;  %v827_v19 = vadd.f32 %v699_v12, %v374_v4  ;;  %v125_v5 = vld [vmem:[#allocation7 + $0x108] sm:$0xff] }
  0x46   :  { %1340 = vmatpush.xpose.msra.mxu0 %v1281_v9  ;;  %v561_v20 = vunpack.c.l.bf16 %v457_v7  ;;  %v1016_v21 = vunpack.c.l.bf16 %v912_v8  ;;  %v692_v22 = vmul.f32 %v1770_v6, %v563_v15  ;;  %v1147_v23 = vmul.f32 %v1772_v11, %v1018_v16  ;;  %v450_v16 = vld [vmem:[#allocation7 + $0x308] sm:$0xff] }
  0x47   :  { %v365_v24 = vmul.f32 %v1768_v1, %v236_v17  ;;  %v239_v25 = vunpack.c.h.bf16 %v133_v53  ;;  %1400 = vmatpush.xpose.msra.mxu3 %v1284_v18  ;;  %v1282_v26 = vadd.f32 %v1154_v13, %v827_v19  ;;  %v564_v29 = vunpack.c.h.bf16 %v458_v62  ;;  %v905_v17 = vld [vmem:[#allocation7 + $0x508] sm:$0xff]  ;;  %v124_v18 = vld [vmem:[#allocation7 + $0x100] sm:$0xff] }
  0x48   :  { %v690_v27 = vmul.f32 %v1770_v6, %v561_v20  ;;  %v1145_v28 = vmul.f32 %v1772_v11, %v1016_v21  ;;  %v820_v31 = vadd.f32 %v692_v22, %v367_v14  ;;  %v1019_v33 = vunpack.c.h.bf16 %v913_v63 }
  0x49   :  { %v368_v32 = vmul.f32 %v1768_v1, %v239_v25  ;;  %v237_v34 = vunpack.c.h.bf16 %v132_v0  ;;  %1360 = vmatpush.xpose.msra.mxu1 %v1282_v26  ;;  %v693_v36 = vmul.f32 %v1770_v6, %v564_v29  ;;  %v562_v37 = vunpack.c.h.bf16 %v457_v7 }
  0x4a   :  { %v818_v35 = vadd.f32 %v690_v27, %v365_v24  ;;  %v1017_v38 = vunpack.c.h.bf16 %v912_v8  ;;  %v1275_v42 = vadd.f32 %v1147_v23, %v820_v31  ;;  %v1148_v43 = vmul.f32 %v1772_v11, %v1019_v33  ;;  %v449_v23 = vld [vmem:[#allocation7 + $0x300] sm:$0xff] }
  0x4b   :  { %v366_v44 = vmul.f32 %v1768_v1, %v237_v34  ;;  %v230_v45 = vunpack.c.l.bf16 %v129_v30  ;;  %v821_v49 = vadd.f32 %v693_v36, %v368_v32  ;;  %v691_v50 = vmul.f32 %v1770_v6, %v562_v37  ;;  %v904_v24 = vld [vmem:[#allocation7 + $0x500] sm:$0xff] }
  0x4c   :  { %v1273_v48 = vadd.f32 %v1145_v28, %v818_v35  ;;  %v1146_v51 = vmul.f32 %v1772_v11, %v1017_v38  ;;  %1381 = vmatpush.xpose.msra.mxu2 %v1275_v42  ;;  %v555_v53 = vunpack.c.l.bf16 %v454_v39  ;;  %v1010_v54 = vunpack.c.l.bf16 %v909_v40 }
  0x4d   :  { %v359_v52 = vmul.f32 %v1768_v1, %v230_v45  ;;  %v228_v55 = vunpack.c.l.bf16 %v128_v41  ;;  %v1276_v56 = vadd.f32 %v1148_v43, %v821_v49  ;;  %v819_v57 = vadd.f32 %v691_v50, %v366_v44  ;;  %v121_v45 = vld [vmem:[#allocation7 + $0xe8] sm:$0xff] }
  0x4e   :  { %1341 = vmatpush.xpose.msra.mxu0 %v1273_v48  ;;  %v553_v58 = vunpack.c.l.bf16 %v453_v46  ;;  %v1008_v59 = vunpack.c.l.bf16 %v908_v47  ;;  %v684_v60 = vmul.f32 %v1770_v6, %v555_v53  ;;  %v1139_v61 = vmul.f32 %v1772_v11, %v1010_v54  ;;  %v446_v54 = vld [vmem:[#allocation7 + $0x2e8] sm:$0xff] }
  0x4f   :  { %v357_v62 = vmul.f32 %v1768_v1, %v228_v55  ;;  %v231_v63 = vunpack.c.h.bf16 %v129_v30  ;;  %1401 = vmatpush.xpose.msra.mxu3 %v1276_v56  ;;  %v1274_v0 = vadd.f32 %v1146_v51, %v819_v57  ;;  %v556_v4 = vunpack.c.h.bf16 %v454_v39  ;;  %v901_v55 = vld [vmem:[#allocation7 + $0x4e8] sm:$0xff]  ;;  %v120_v56 = vld [vmem:[#allocation7 + $0xe0] sm:$0xff] }
  0x50   :  { %v682_v2 = vmul.f32 %v1770_v6, %v553_v58  ;;  %v1137_v3 = vmul.f32 %v1772_v11, %v1008_v59  ;;  %v812_v7 = vadd.f32 %v684_v60, %v359_v52  ;;  %v1011_v9 = vunpack.c.h.bf16 %v909_v40 }
  0x51   :  { %v360_v8 = vmul.f32 %v1768_v1, %v231_v63  ;;  %v229_v10 = vunpack.c.h.bf16 %v128_v41  ;;  %1361 = vmatpush.xpose.msra.mxu1 %v1274_v0  ;;  %v685_v13 = vmul.f32 %v1770_v6, %v556_v4  ;;  %v554_v14 = vunpack.c.h.bf16 %v453_v46 }
  0x52   :  { %v810_v12 = vadd.f32 %v682_v2, %v357_v62  ;;  %v1009_v15 = vunpack.c.h.bf16 %v908_v47  ;;  %v1267_v19 = vadd.f32 %v1139_v61, %v812_v7  ;;  %v1140_v20 = vmul.f32 %v1772_v11, %v1011_v9  ;;  %v445_v61 = vld [vmem:[#allocation7 + $0x2e0] sm:$0xff] }
  0x53   :  { %v358_v21 = vmul.f32 %v1768_v1, %v229_v10  ;;  %v222_v22 = vunpack.c.l.bf16 %v125_v5  ;;  %v813_v26 = vadd.f32 %v685_v13, %v360_v8  ;;  %v683_v27 = vmul.f32 %v1770_v6, %v554_v14  ;;  %v900_v62 = vld [vmem:[#allocation7 + $0x4e0] sm:$0xff] }
  0x54   :  { %v1265_v25 = vadd.f32 %v1137_v3, %v810_v12  ;;  %v1138_v28 = vmul.f32 %v1772_v11, %v1009_v15  ;;  %1382 = vmatpush.xpose.msra.mxu2 %v1267_v19  ;;  %v547_v30 = vunpack.c.l.bf16 %v450_v16  ;;  %v1002_v31 = vunpack.c.l.bf16 %v905_v17 }
  0x55   :  { %v351_v29 = vmul.f32 %v1768_v1, %v222_v22  ;;  %v220_v32 = vunpack.c.l.bf16 %v124_v18  ;;  %v1268_v33 = vadd.f32 %v1140_v20, %v813_v26  ;;  %v811_v34 = vadd.f32 %v683_v27, %v358_v21  ;;  %v117_v22 = vld [vmem:[#allocation7 + $0xc8] sm:$0xff] }
  0x56   :  { %1342 = vmatpush.xpose.msra.mxu0 %v1265_v25  ;;  %v545_v35 = vunpack.c.l.bf16 %v449_v23  ;;  %v1000_v36 = vunpack.c.l.bf16 %v904_v24  ;;  %v676_v37 = vmul.f32 %v1770_v6, %v547_v30  ;;  %v1131_v38 = vmul.f32 %v1772_v11, %v1002_v31  ;;  %v442_v31 = vld [vmem:[#allocation7 + $0x2c8] sm:$0xff] }
  0x57   :  { %v349_v39 = vmul.f32 %v1768_v1, %v220_v32  ;;  %v223_v40 = vunpack.c.h.bf16 %v125_v5  ;;  %1402 = vmatpush.xpose.msra.mxu3 %v1268_v33  ;;  %v1266_v41 = vadd.f32 %v1138_v28, %v811_v34  ;;  %v548_v44 = vunpack.c.h.bf16 %v450_v16  ;;  %v897_v32 = vld [vmem:[#allocation7 + $0x4c8] sm:$0xff]  ;;  %v116_v33 = vld [vmem:[#allocation7 + $0xc0] sm:$0xff] }
  0x58   :  { %v674_v42 = vmul.f32 %v1770_v6, %v545_v35  ;;  %v1129_v43 = vmul.f32 %v1772_v11, %v1000_v36  ;;  %v804_v46 = vadd.f32 %v676_v37, %v351_v29  ;;  %v1003_v48 = vunpack.c.h.bf16 %v905_v17 }
  0x59   :  { %v352_v47 = vmul.f32 %v1768_v1, %v223_v40  ;;  %v221_v49 = vunpack.c.h.bf16 %v124_v18  ;;  %1362 = vmatpush.xpose.msra.mxu1 %v1266_v41  ;;  %v677_v51 = vmul.f32 %v1770_v6, %v548_v44  ;;  %v546_v52 = vunpack.c.h.bf16 %v449_v23 }
  0x5a   :  { %v802_v50 = vadd.f32 %v674_v42, %v349_v39  ;;  %v1001_v53 = vunpack.c.h.bf16 %v904_v24  ;;  %v1259_v57 = vadd.f32 %v1131_v38, %v804_v46  ;;  %v1132_v58 = vmul.f32 %v1772_v11, %v1003_v48  ;;  %v441_v38 = vld [vmem:[#allocation7 + $0x2c0] sm:$0xff] }
  0x5b   :  { %v350_v59 = vmul.f32 %v1768_v1, %v221_v49  ;;  %v214_v60 = vunpack.c.l.bf16 %v121_v45  ;;  %v805_v0 = vadd.f32 %v677_v51, %v352_v47  ;;  %v675_v2 = vmul.f32 %v1770_v6, %v546_v52  ;;  %v896_v39 = vld [vmem:[#allocation7 + $0x4c0] sm:$0xff] }
  0x5c   :  { %v1257_v63 = vadd.f32 %v1129_v43, %v802_v50  ;;  %v1130_v3 = vmul.f32 %v1772_v11, %v1001_v53  ;;  %1383 = vmatpush.xpose.msra.mxu2 %v1259_v57  ;;  %v539_v5 = vunpack.c.l.bf16 %v446_v54  ;;  %v994_v7 = vunpack.c.l.bf16 %v901_v55 }
  0x5d   :  { %v343_v4 = vmul.f32 %v1768_v1, %v214_v60  ;;  %v212_v8 = vunpack.c.l.bf16 %v120_v56  ;;  %v1260_v9 = vadd.f32 %v1132_v58, %v805_v0  ;;  %v803_v10 = vadd.f32 %v675_v2, %v350_v59  ;;  %v113_v60 = vld [vmem:[#allocation7 + $0xa8] sm:$0xff] }
  0x5e   :  { %1343 = vmatpush.xpose.msra.mxu0 %v1257_v63  ;;  %v537_v12 = vunpack.c.l.bf16 %v445_v61  ;;  %v992_v13 = vunpack.c.l.bf16 %v900_v62  ;;  %v668_v14 = vmul.f32 %v1770_v6, %v539_v5  ;;  %v1123_v15 = vmul.f32 %v1772_v11, %v994_v7  ;;  %v438_v7 = vld [vmem:[#allocation7 + $0x2a8] sm:$0xff] }
  0x5f   :  { %v341_v16 = vmul.f32 %v1768_v1, %v212_v8  ;;  %v215_v17 = vunpack.c.h.bf16 %v121_v45  ;;  %1403 = vmatpush.xpose.msra.mxu3 %v1260_v9  ;;  %v1258_v18 = vadd.f32 %v1130_v3, %v803_v10  ;;  %v540_v21 = vunpack.c.h.bf16 %v446_v54  ;;  %v893_v8 = vld [vmem:[#allocation7 + $0x4a8] sm:$0xff]  ;;  %v112_v9 = vld [vmem:[#allocation7 + $0xa0] sm:$0xff] }
  0x60   :  { %v666_v19 = vmul.f32 %v1770_v6, %v537_v12  ;;  %v1121_v20 = vmul.f32 %v1772_v11, %v992_v13  ;;  %v796_v23 = vadd.f32 %v668_v14, %v343_v4  ;;  %v995_v25 = vunpack.c.h.bf16 %v901_v55 }
  0x61   :  { %v344_v24 = vmul.f32 %v1768_v1, %v215_v17  ;;  %v213_v26 = vunpack.c.h.bf16 %v120_v56  ;;  %1363 = vmatpush.xpose.msra.mxu1 %v1258_v18  ;;  %v669_v28 = vmul.f32 %v1770_v6, %v540_v21  ;;  %v538_v29 = vunpack.c.h.bf16 %v445_v61 }
  0x62   :  { %v794_v27 = vadd.f32 %v666_v19, %v341_v16  ;;  %v993_v30 = vunpack.c.h.bf16 %v900_v62  ;;  %v1251_v34 = vadd.f32 %v1123_v15, %v796_v23  ;;  %v1124_v35 = vmul.f32 %v1772_v11, %v995_v25  ;;  %v437_v15 = vld [vmem:[#allocation7 + $0x2a0] sm:$0xff] }
  0x63   :  { %v342_v36 = vmul.f32 %v1768_v1, %v213_v26  ;;  %v206_v37 = vunpack.c.l.bf16 %v117_v22  ;;  %v797_v41 = vadd.f32 %v669_v28, %v344_v24  ;;  %v667_v42 = vmul.f32 %v1770_v6, %v538_v29  ;;  %v892_v16 = vld [vmem:[#allocation7 + $0x4a0] sm:$0xff] }
  0x64   :  { %v1249_v40 = vadd.f32 %v1121_v20, %v794_v27  ;;  %v1122_v43 = vmul.f32 %v1772_v11, %v993_v30  ;;  %1384 = vmatpush.xpose.msra.mxu2 %v1251_v34  ;;  %v531_v45 = vunpack.c.l.bf16 %v442_v31  ;;  %v986_v46 = vunpack.c.l.bf16 %v897_v32 }
  0x65   :  { %v335_v44 = vmul.f32 %v1768_v1, %v206_v37  ;;  %v204_v47 = vunpack.c.l.bf16 %v116_v33  ;;  %v1252_v48 = vadd.f32 %v1124_v35, %v797_v41  ;;  %v795_v49 = vadd.f32 %v667_v42, %v342_v36  ;;  %v109_v37 = vld [vmem:[#allocation7 + $0x88] sm:$0xff] }
  0x66   :  { %1344 = vmatpush.xpose.msra.mxu0 %v1249_v40  ;;  %v529_v50 = vunpack.c.l.bf16 %v441_v38  ;;  %v984_v51 = vunpack.c.l.bf16 %v896_v39  ;;  %v660_v52 = vmul.f32 %v1770_v6, %v531_v45  ;;  %v1115_v53 = vmul.f32 %v1772_v11, %v986_v46  ;;  %v434_v46 = vld [vmem:[#allocation7 + $0x288] sm:$0xff] }
  0x67   :  { %v333_v54 = vmul.f32 %v1768_v1, %v204_v47  ;;  %v207_v55 = vunpack.c.h.bf16 %v117_v22  ;;  %1404 = vmatpush.xpose.msra.mxu3 %v1252_v48  ;;  %v1250_v56 = vadd.f32 %v1122_v43, %v795_v49  ;;  %v532_v59 = vunpack.c.h.bf16 %v442_v31  ;;  %v889_v47 = vld [vmem:[#allocation7 + $0x488] sm:$0xff]  ;;  %v108_v48 = vld [vmem:[#allocation7 + $0x80] sm:$0xff] }
  0x68   :  { %v658_v57 = vmul.f32 %v1770_v6, %v529_v50  ;;  %v1113_v58 = vmul.f32 %v1772_v11, %v984_v51  ;;  %v788_v61 = vadd.f32 %v660_v52, %v335_v44  ;;  %v987_v63 = vunpack.c.h.bf16 %v897_v32 }
  0x69   :  { %v336_v62 = vmul.f32 %v1768_v1, %v207_v55  ;;  %v205_v0 = vunpack.c.h.bf16 %v116_v33  ;;  %1364 = vmatpush.xpose.msra.mxu1 %v1250_v56  ;;  %v661_v3 = vmul.f32 %v1770_v6, %v532_v59  ;;  %v530_v4 = vunpack.c.h.bf16 %v441_v38 }
  0x6a   :  { %v786_v2 = vadd.f32 %v658_v57, %v333_v54  ;;  %v985_v5 = vunpack.c.h.bf16 %v896_v39  ;;  %v1243_v10 = vadd.f32 %v1115_v53, %v788_v61  ;;  %v1116_v12 = vmul.f32 %v1772_v11, %v987_v63  ;;  %v433_v53 = vld [vmem:[#allocation7 + $0x280] sm:$0xff] }
  0x6b   :  { %v334_v13 = vmul.f32 %v1768_v1, %v205_v0  ;;  %v198_v14 = vunpack.c.l.bf16 %v113_v60  ;;  %v789_v18 = vadd.f32 %v661_v3, %v336_v62  ;;  %v659_v19 = vmul.f32 %v1770_v6, %v530_v4  ;;  %v888_v54 = vld [vmem:[#allocation7 + $0x480] sm:$0xff] }
  0x6c   :  { %v1241_v17 = vadd.f32 %v1113_v58, %v786_v2  ;;  %v1114_v20 = vmul.f32 %v1772_v11, %v985_v5  ;;  %1385 = vmatpush.xpose.msra.mxu2 %v1243_v10  ;;  %v523_v22 = vunpack.c.l.bf16 %v438_v7  ;;  %v978_v23 = vunpack.c.l.bf16 %v893_v8 }
  0x6d   :  { %v327_v21 = vmul.f32 %v1768_v1, %v198_v14  ;;  %v196_v24 = vunpack.c.l.bf16 %v112_v9  ;;  %v1244_v25 = vadd.f32 %v1116_v12, %v789_v18  ;;  %v787_v26 = vadd.f32 %v659_v19, %v334_v13  ;;  %v105_v14 = vld [vmem:[#allocation7 + $0x68] sm:$0xff] }
  0x6e   :  { %1345 = vmatpush.xpose.msra.mxu0 %v1241_v17  ;;  %v521_v27 = vunpack.c.l.bf16 %v437_v15  ;;  %v976_v28 = vunpack.c.l.bf16 %v892_v16  ;;  %v652_v29 = vmul.f32 %v1770_v6, %v523_v22  ;;  %v1107_v30 = vmul.f32 %v1772_v11, %v978_v23  ;;  %v430_v23 = vld [vmem:[#allocation7 + $0x268] sm:$0xff] }
  0x6f   :  { %v325_v31 = vmul.f32 %v1768_v1, %v196_v24  ;;  %v199_v32 = vunpack.c.h.bf16 %v113_v60  ;;  %1405 = vmatpush.xpose.msra.mxu3 %v1244_v25  ;;  %v1242_v33 = vadd.f32 %v1114_v20, %v787_v26  ;;  %v524_v36 = vunpack.c.h.bf16 %v438_v7  ;;  %v885_v24 = vld [vmem:[#allocation7 + $0x468] sm:$0xff]  ;;  %v104_v25 = vld [vmem:[#allocation7 + $0x60] sm:$0xff] }
  0x70   :  { %v650_v34 = vmul.f32 %v1770_v6, %v521_v27  ;;  %v1105_v35 = vmul.f32 %v1772_v11, %v976_v28  ;;  %v780_v38 = vadd.f32 %v652_v29, %v327_v21  ;;  %v979_v40 = vunpack.c.h.bf16 %v893_v8 }
  0x71   :  { %v328_v39 = vmul.f32 %v1768_v1, %v199_v32  ;;  %v197_v41 = vunpack.c.h.bf16 %v112_v9  ;;  %1365 = vmatpush.xpose.msra.mxu1 %v1242_v33  ;;  %v653_v43 = vmul.f32 %v1770_v6, %v524_v36  ;;  %v522_v44 = vunpack.c.h.bf16 %v437_v15 }
  0x72   :  { %v778_v42 = vadd.f32 %v650_v34, %v325_v31  ;;  %v977_v45 = vunpack.c.h.bf16 %v892_v16  ;;  %v1235_v49 = vadd.f32 %v1107_v30, %v780_v38  ;;  %v1108_v50 = vmul.f32 %v1772_v11, %v979_v40  ;;  %v429_v30 = vld [vmem:[#allocation7 + $0x260] sm:$0xff] }
  0x73   :  { %v326_v51 = vmul.f32 %v1768_v1, %v197_v41  ;;  %v190_v52 = vunpack.c.l.bf16 %v109_v37  ;;  %v781_v56 = vadd.f32 %v653_v43, %v328_v39  ;;  %v651_v57 = vmul.f32 %v1770_v6, %v522_v44  ;;  %v884_v31 = vld [vmem:[#allocation7 + $0x460] sm:$0xff] }
  0x74   :  { %v1233_v55 = vadd.f32 %v1105_v35, %v778_v42  ;;  %v1106_v58 = vmul.f32 %v1772_v11, %v977_v45  ;;  %1386 = vmatpush.xpose.msra.mxu2 %v1235_v49  ;;  %v515_v60 = vunpack.c.l.bf16 %v434_v46  ;;  %v970_v61 = vunpack.c.l.bf16 %v889_v47 }
  0x75   :  { %v319_v59 = vmul.f32 %v1768_v1, %v190_v52  ;;  %v188_v62 = vunpack.c.l.bf16 %v108_v48  ;;  %v1236_v63 = vadd.f32 %v1108_v50, %v781_v56  ;;  %v779_v0 = vadd.f32 %v651_v57, %v326_v51  ;;  %v101_v52 = vld [vmem:[#allocation7 + $0x48] sm:$0xff] }
  0x76   :  { %1346 = vmatpush.xpose.msra.mxu0 %v1233_v55  ;;  %v513_v2 = vunpack.c.l.bf16 %v433_v53  ;;  %v968_v3 = vunpack.c.l.bf16 %v888_v54  ;;  %v644_v4 = vmul.f32 %v1770_v6, %v515_v60  ;;  %v1099_v5 = vmul.f32 %v1772_v11, %v970_v61  ;;  %v426_v61 = vld [vmem:[#allocation7 + $0x248] sm:$0xff] }
  0x77   :  { %v317_v7 = vmul.f32 %v1768_v1, %v188_v62  ;;  %v191_v8 = vunpack.c.h.bf16 %v109_v37  ;;  %1406 = vmatpush.xpose.msra.mxu3 %v1236_v63  ;;  %v1234_v9 = vadd.f32 %v1106_v58, %v779_v0  ;;  %v516_v13 = vunpack.c.h.bf16 %v434_v46  ;;  %v881_v62 = vld [vmem:[#allocation7 + $0x448] sm:$0xff]  ;;  %v100_v63 = vld [vmem:[#allocation7 + $0x40] sm:$0xff] }
  0x78   :  { %v642_v10 = vmul.f32 %v1770_v6, %v513_v2  ;;  %v1097_v12 = vmul.f32 %v1772_v11, %v968_v3  ;;  %v772_v15 = vadd.f32 %v644_v4, %v319_v59  ;;  %v971_v17 = vunpack.c.h.bf16 %v889_v47 }
  0x79   :  { %v320_v16 = vmul.f32 %v1768_v1, %v191_v8  ;;  %v189_v18 = vunpack.c.h.bf16 %v108_v48  ;;  %1366 = vmatpush.xpose.msra.mxu1 %v1234_v9  ;;  %v645_v20 = vmul.f32 %v1770_v6, %v516_v13  ;;  %v514_v21 = vunpack.c.h.bf16 %v433_v53 }
  0x7a   :  { %v770_v19 = vadd.f32 %v642_v10, %v317_v7  ;;  %v969_v22 = vunpack.c.h.bf16 %v888_v54  ;;  %v1227_v26 = vadd.f32 %v1099_v5, %v772_v15  ;;  %v1100_v27 = vmul.f32 %v1772_v11, %v971_v17  ;;  %v425_v5 = vld [vmem:[#allocation7 + $0x240] sm:$0xff] }
  0x7b   :  { %v318_v28 = vmul.f32 %v1768_v1, %v189_v18  ;;  %v182_v29 = vunpack.c.l.bf16 %v105_v14  ;;  %v773_v33 = vadd.f32 %v645_v20, %v320_v16  ;;  %v643_v34 = vmul.f32 %v1770_v6, %v514_v21  ;;  %v880_v7 = vld [vmem:[#allocation7 + $0x440] sm:$0xff] }
  0x7c   :  { %v1225_v32 = vadd.f32 %v1097_v12, %v770_v19  ;;  %v1098_v35 = vmul.f32 %v1772_v11, %v969_v22  ;;  %1387 = vmatpush.xpose.msra.mxu2 %v1227_v26  ;;  %v507_v37 = vunpack.c.l.bf16 %v430_v23  ;;  %v962_v38 = vunpack.c.l.bf16 %v885_v24 }
  0x7d   :  { %v311_v36 = vmul.f32 %v1768_v1, %v182_v29  ;;  %v180_v39 = vunpack.c.l.bf16 %v104_v25  ;;  %v1228_v40 = vadd.f32 %v1100_v27, %v773_v33  ;;  %v771_v41 = vadd.f32 %v643_v34, %v318_v28  ;;  %v97_v29 = vld [vmem:[#allocation7 + $0x28] sm:$0xff] }
  0x7e   :  { %1347 = vmatpush.xpose.msra.mxu0 %v1225_v32  ;;  %v505_v42 = vunpack.c.l.bf16 %v429_v30  ;;  %v960_v43 = vunpack.c.l.bf16 %v884_v31  ;;  %v636_v44 = vmul.f32 %v1770_v6, %v507_v37  ;;  %v1091_v45 = vmul.f32 %v1772_v11, %v962_v38  ;;  %v422_v38 = vld [vmem:[#allocation7 + $0x228] sm:$0xff] }
  0x7f   :  { %v309_v46 = vmul.f32 %v1768_v1, %v180_v39  ;;  %v183_v47 = vunpack.c.h.bf16 %v105_v14  ;;  %1407 = vmatpush.xpose.msra.mxu3 %v1228_v40  ;;  %v1226_v48 = vadd.f32 %v1098_v35, %v771_v41  ;;  %v508_v51 = vunpack.c.h.bf16 %v430_v23  ;;  %v877_v39 = vld [vmem:[#allocation7 + $0x428] sm:$0xff]  ;;  %v96_v40 = vld [vmem:[#allocation7 + $0x20] sm:$0xff] }
  0x80   :  { %v634_v49 = vmul.f32 %v1770_v6, %v505_v42  ;;  %v1089_v50 = vmul.f32 %v1772_v11, %v960_v43  ;;  %v764_v53 = vadd.f32 %v636_v44, %v311_v36  ;;  %v963_v55 = vunpack.c.h.bf16 %v885_v24 }
  0x81   :  { %v312_v54 = vmul.f32 %v1768_v1, %v183_v47  ;;  %v181_v56 = vunpack.c.h.bf16 %v104_v25  ;;  %1367 = vmatpush.xpose.msra.mxu1 %v1226_v48  ;;  %v637_v58 = vmul.f32 %v1770_v6, %v508_v51  ;;  %v506_v59 = vunpack.c.h.bf16 %v429_v30 }
  0x82   :  { %v762_v57 = vadd.f32 %v634_v49, %v309_v46  ;;  %v961_v60 = vunpack.c.h.bf16 %v884_v31  ;;  %v1219_v0 = vadd.f32 %v1091_v45, %v764_v53  ;;  %v1092_v2 = vmul.f32 %v1772_v11, %v963_v55  ;;  %v421_v45 = vld [vmem:[#allocation7 + $0x220] sm:$0xff] }
  0x83   :  { %v310_v3 = vmul.f32 %v1768_v1, %v181_v56  ;;  %v174_v4 = vunpack.c.l.bf16 %v101_v52  ;;  %v765_v9 = vadd.f32 %v637_v58, %v312_v54  ;;  %v635_v10 = vmul.f32 %v1770_v6, %v506_v59  ;;  %v876_v46 = vld [vmem:[#allocation7 + $0x420] sm:$0xff] }
  0x84   :  { %v1217_v8 = vadd.f32 %v1089_v50, %v762_v57  ;;  %v1090_v12 = vmul.f32 %v1772_v11, %v961_v60  ;;  %1388 = vmatpush.xpose.msra.mxu2 %v1219_v0  ;;  %v499_v14 = vunpack.c.l.bf16 %v426_v61  ;;  %v954_v15 = vunpack.c.l.bf16 %v881_v62 }
  0x85   :  { %v303_v13 = vmul.f32 %v1768_v1, %v174_v4  ;;  %v172_v16 = vunpack.c.l.bf16 %v100_v63  ;;  %v1220_v17 = vadd.f32 %v1092_v2, %v765_v9  ;;  %v763_v18 = vadd.f32 %v635_v10, %v310_v3  ;;  %v93_v4 = vld [vmem:[#allocation7 + $0x8] sm:$0xff] }
  0x86   :  { %1348 = vmatpush.xpose.msra.mxu0 %v1217_v8  ;;  %v497_v19 = vunpack.c.l.bf16 %v425_v5  ;;  %v952_v20 = vunpack.c.l.bf16 %v880_v7  ;;  %v628_v21 = vmul.f32 %v1770_v6, %v499_v14  ;;  %v1083_v22 = vmul.f32 %v1772_v11, %v954_v15  ;;  %v418_v15 = vld [vmem:[#allocation7 + $0x208] sm:$0xff] }
  0x87   :  { %v301_v23 = vmul.f32 %v1768_v1, %v172_v16  ;;  %v175_v24 = vunpack.c.h.bf16 %v101_v52  ;;  %1408 = vmatpush.xpose.msra.mxu3 %v1220_v17  ;;  %v1218_v25 = vadd.f32 %v1090_v12, %v763_v18  ;;  %v500_v28 = vunpack.c.h.bf16 %v426_v61  ;;  %v873_v16 = vld [vmem:[#allocation7 + $0x408] sm:$0xff]  ;;  %v1950_v17 = vld [vmem:[#allocation7 + $0x1f8] sm:$0xff] }
  0x88   :  { %v626_v26 = vmul.f32 %v1770_v6, %v497_v19  ;;  %v1081_v27 = vmul.f32 %v1772_v11, %v952_v20  ;;  %v756_v30 = vadd.f32 %v628_v21, %v303_v13  ;;  %v955_v32 = vunpack.c.h.bf16 %v881_v62 }
  0x89   :  { %v304_v31 = vmul.f32 %v1768_v1, %v175_v24  ;;  %v173_v33 = vunpack.c.h.bf16 %v100_v63  ;;  %1368 = vmatpush.xpose.msra.mxu1 %v1218_v25  ;;  %v629_v35 = vmul.f32 %v1770_v6, %v500_v28  ;;  %v498_v36 = vunpack.c.h.bf16 %v425_v5  ;;  %v1960_v28 = vld [vmem:[#allocation7] sm:$0xff] }
  0x8a   :  { %v754_v34 = vadd.f32 %v626_v26, %v301_v23  ;;  %v953_v37 = vunpack.c.h.bf16 %v880_v7  ;;  %v1211_v41 = vadd.f32 %v1083_v22, %v756_v30  ;;  %v1084_v42 = vmul.f32 %v1772_v11, %v955_v32  ;;  %v1954_v22 = vld [vmem:[#allocation7 + $0x3f8] sm:$0xff] }
  0x8b   :  { %v302_v43 = vmul.f32 %v1768_v1, %v173_v33  ;;  %v166_v44 = vunpack.c.l.bf16 %v97_v29  ;;  %v757_v48 = vadd.f32 %v629_v35, %v304_v31  ;;  %v627_v49 = vmul.f32 %v1770_v6, %v498_v36  ;;  %v1956_v23 = vld [vmem:[#allocation7 + $0x5f8] sm:$0xff]  ;;  %v1964_v33 = vld [vmem:[#allocation7 + $0x200] sm:$0xff] }
  0x8c   :  { %v1209_v47 = vadd.f32 %v1081_v27, %v754_v34  ;;  %v1082_v50 = vmul.f32 %v1772_v11, %v953_v37  ;;  %1389 = vmatpush.xpose.msra.mxu2 %v1211_v41  ;;  %v491_v52 = vunpack.c.l.bf16 %v422_v38  ;;  %v946_v53 = vunpack.c.l.bf16 %v877_v39 }
  0x8d   :  { %v295_v51 = vmul.f32 %v1768_v1, %v166_v44  ;;  %v164_v54 = vunpack.c.l.bf16 %v96_v40  ;;  %v1212_v55 = vadd.f32 %v1084_v42, %v757_v48  ;;  %v755_v56 = vadd.f32 %v627_v49, %v302_v43 }
  0x8e   :  { %1349 = vmatpush.xpose.msra.mxu0 %v1209_v47  ;;  %v489_v57 = vunpack.c.l.bf16 %v421_v45  ;;  %v944_v58 = vunpack.c.l.bf16 %v876_v46  ;;  %v620_v59 = vmul.f32 %v1770_v6, %v491_v52  ;;  %v1075_v60 = vmul.f32 %v1772_v11, %v946_v53  ;;  %v154_v47 = vld [vmem:[#allocation7 + $0x1f0] sm:$0xff] }
  0x8f   :  { %v293_v61 = vmul.f32 %v1768_v1, %v164_v54  ;;  %v167_v62 = vunpack.c.h.bf16 %v97_v29  ;;  %1409 = vmatpush.xpose.msra.mxu3 %v1212_v55  ;;  %v1210_v63 = vadd.f32 %v1082_v50, %v755_v56  ;;  %v492_v3 = vunpack.c.h.bf16 %v422_v38  ;;  %v1968_v38 = vld [vmem:[#allocation7 + $0x400] sm:$0xff]  ;;  %v479_v56 = vld [vmem:[#allocation7 + $0x3f0] sm:$0xff] }
  0x90   :  { %v618_v0 = vmul.f32 %v1770_v6, %v489_v57  ;;  %v1073_v2 = vmul.f32 %v1772_v11, %v944_v58  ;;  %v748_v5 = vadd.f32 %v620_v59, %v295_v51  ;;  %v947_v8 = vunpack.c.h.bf16 %v877_v39  ;;  %v934_v57 = vld [vmem:[#allocation7 + $0x5f0] sm:$0xff] }
  0x91   :  { %v296_v7 = vmul.f32 %v1768_v1, %v167_v62  ;;  %v165_v9 = vunpack.c.h.bf16 %v96_v40  ;;  %1369 = vmatpush.xpose.msra.mxu1 %v1210_v63  ;;  %v621_v12 = vmul.f32 %v1770_v6, %v492_v3  ;;  %v490_v13 = vunpack.c.h.bf16 %v421_v45 }
  0x92   :  { %v746_v10 = vadd.f32 %v618_v0, %v293_v61  ;;  %v945_v14 = vunpack.c.h.bf16 %v876_v46  ;;  %v1203_v18 = vadd.f32 %v1075_v60, %v748_v5  ;;  %v1076_v19 = vmul.f32 %v1772_v11, %v947_v8 }
  0x93   :  { %v294_v20 = vmul.f32 %v1768_v1, %v165_v9  ;;  %v158_v21 = vunpack.c.l.bf16 %v93_v4  ;;  %v749_v25 = vadd.f32 %v621_v12, %v296_v7  ;;  %v619_v26 = vmul.f32 %v1770_v6, %v490_v13 }
  0x94   :  { %v1201_v24 = vadd.f32 %v1073_v2, %v746_v10  ;;  %v1074_v27 = vmul.f32 %v1772_v11, %v945_v14  ;;  %1390 = vmatpush.xpose.msra.mxu2 %v1203_v18  ;;  %v483_v30 = vunpack.c.l.bf16 %v418_v15  ;;  %v938_v31 = vunpack.c.l.bf16 %v873_v16 }
  0x95   :  { %v287_v29 = vmul.f32 %v1768_v1, %v158_v21  ;;  %v282_v32 = vunpack.c.l.bf16 %v1950_v17  ;;  %v1204_v34 = vadd.f32 %v1076_v19, %v749_v25  ;;  %v747_v35 = vadd.f32 %v619_v26, %v294_v20  ;;  %v151_v21 = vld [vmem:[#allocation7 + $0x1d8] sm:$0xff] }
  0x96   :  { %1350 = vmatpush.xpose.msra.mxu0 %v1201_v24  ;;  %v607_v36 = vunpack.c.l.bf16 %v1954_v22  ;;  %v1062_v37 = vunpack.c.l.bf16 %v1956_v23  ;;  %v612_v39 = vmul.f32 %v1770_v6, %v483_v30  ;;  %v1067_v40 = vmul.f32 %v1772_v11, %v938_v31  ;;  %v476_v30 = vld [vmem:[#allocation7 + $0x3d8] sm:$0xff] }
  0x97   :  { %v411_v41 = vmul.f32 %v1768_v1, %v282_v32  ;;  %v156_v42 = vunpack.c.l.bf16 %v1960_v28  ;;  %1410 = vmatpush.xpose.msra.mxu3 %v1204_v34  ;;  %v1202_v43 = vadd.f32 %v1074_v27, %v747_v35  ;;  %v481_v46 = vunpack.c.l.bf16 %v1964_v33  ;;  %v931_v31 = vld [vmem:[#allocation7 + $0x5d8] sm:$0xff]  ;;  %v150_v32 = vld [vmem:[#allocation7 + $0x1d0] sm:$0xff] }
  0x98   :  { %v736_v44 = vmul.f32 %v1770_v6, %v607_v36  ;;  %v1191_v45 = vmul.f32 %v1772_v11, %v1062_v37  ;;  %v740_v48 = vadd.f32 %v612_v39, %v287_v29  ;;  %v936_v50 = vunpack.c.l.bf16 %v1968_v38  ;;  %v475_v37 = vld [vmem:[#allocation7 + $0x3d0] sm:$0xff] }
  0x99   :  { %v285_v49 = vmul.f32 %v1768_v1, %v156_v42  ;;  %v159_v51 = vunpack.c.h.bf16 %v93_v4  ;;  %1370 = vmatpush.xpose.msra.mxu1 %v1202_v43  ;;  %v610_v53 = vmul.f32 %v1770_v6, %v481_v46  ;;  %v484_v54 = vunpack.c.h.bf16 %v418_v15  ;;  %v930_v39 = vld [vmem:[#allocation7 + $0x5d0] sm:$0xff] }
  0x9a   :  { %v864_v52 = vadd.f32 %v736_v44, %v411_v41  ;;  %v939_v55 = vunpack.c.h.bf16 %v873_v16  ;;  %v1195_v58 = vadd.f32 %v1067_v40, %v740_v48  ;;  %v1065_v59 = vmul.f32 %v1772_v11, %v936_v50 }
  0x9b   :  { %v288_v60 = vmul.f32 %v1768_v1, %v159_v51  ;;  %v280_v61 = vunpack.c.l.bf16 %v154_v47  ;;  %v738_v63 = vadd.f32 %v610_v53, %v285_v49  ;;  %v613_v0 = vmul.f32 %v1770_v6, %v484_v54 }
  0x9c   :  { %v1319_v62 = vadd.f32 %v1191_v45, %v864_v52  ;;  %v1068_v2 = vmul.f32 %v1772_v11, %v939_v55  ;;  %1391 = vmatpush.xpose.msra.mxu2 %v1195_v58  ;;  %v605_v4 = vunpack.c.l.bf16 %v479_v56  ;;  %v1060_v5 = vunpack.c.l.bf16 %v934_v57 }
  0x9d   :  { %v409_v3 = vmul.f32 %v1768_v1, %v280_v61  ;;  %v283_v7 = vunpack.c.h.bf16 %v1950_v17  ;;  %v1193_v8 = vadd.f32 %v1065_v59, %v738_v63  ;;  %v741_v9 = vadd.f32 %v613_v0, %v288_v60  ;;  %v147_v59 = vld [vmem:[#allocation7 + $0x1b8] sm:$0xff] }
  0x9e   :  { %v608_v10 = vunpack.c.h.bf16 %v1954_v22  ;;  %v1063_v12 = vunpack.c.h.bf16 %v1956_v23  ;;  %v734_v13 = vmul.f32 %v1770_v6, %v605_v4  ;;  %v1189_v14 = vmul.f32 %v1772_v11, %v1060_v5  ;;  %v472_v5 = vld [vmem:[#allocation7 + $0x3b8] sm:$0xff] }
  0x9f   :  { %v412_v15 = vmul.f32 %v1768_v1, %v283_v7  ;;  %v157_v16 = vunpack.c.h.bf16 %v1960_v28  ;;  %1351 = vmatpush.xpose.msra.mxu0 %v1193_v8  ;;  %v1196_v18 = vadd.f32 %v1068_v2, %v741_v9  ;;  %v482_v20 = vunpack.c.h.bf16 %v1964_v33  ;;  %v927_v7 = vld [vmem:[#allocation7 + $0x5b8] sm:$0xff]  ;;  %v146_v8 = vld [vmem:[#allocation7 + $0x1b0] sm:$0xff] }
  0xa0   :  { %1456 = vmatpush.xpose.msrb.mxu2 %v1319_v62  ;;  %v737_v19 = vmul.f32 %v1770_v6, %v608_v10  ;;  %v1192_v17 = vmul.f32 %v1772_v11, %v1063_v12  ;;  %v862_v22 = vadd.f32 %v734_v13, %v409_v3  ;;  %v937_v24 = vunpack.c.h.bf16 %v1968_v38 }
  0xa1   :  { %v286_v23 = vmul.f32 %v1768_v1, %v157_v16  ;;  %v281_v25 = vunpack.c.h.bf16 %v154_v47  ;;  %1411 = vmatpush.xpose.msra.mxu3 %v1196_v18  ;;  %v611_v27 = vmul.f32 %v1770_v6, %v482_v20  ;;  %v606_v28 = vunpack.c.h.bf16 %v479_v56 }
  0xa2   :  { %v865_v26 = vadd.f32 %v737_v19, %v412_v15  ;;  %v1061_v29 = vunpack.c.h.bf16 %v934_v57  ;;  %v1317_v34 = vadd.f32 %v1189_v14, %v862_v22  ;;  %v1066_v35 = vmul.f32 %v1772_v11, %v937_v24  ;;  %v471_v14 = vld [vmem:[#allocation7 + $0x3b0] sm:$0xff] }
  0xa3   :  { %v410_v33 = vmul.f32 %v1768_v1, %v281_v25  ;;  %v274_v36 = vunpack.c.l.bf16 %v151_v21  ;;  %v739_v38 = vadd.f32 %v611_v27, %v286_v23  ;;  %v735_v41 = vmul.f32 %v1770_v6, %v606_v28  ;;  %v926_v15 = vld [vmem:[#allocation7 + $0x5b0] sm:$0xff] }
  0xa4   :  { %v1320_v40 = vadd.f32 %v1192_v17, %v865_v26  ;;  %v1190_v42 = vmul.f32 %v1772_v11, %v1061_v29  ;;  %1416 = vmatpush.xpose.msrb.mxu0 %v1317_v34  ;;  %v599_v44 = vunpack.c.l.bf16 %v476_v30  ;;  %v1054_v45 = vunpack.c.l.bf16 %v931_v31 }
  0xa5   :  { %v403_v43 = vmul.f32 %v1768_v1, %v274_v36  ;;  %v272_v46 = vunpack.c.l.bf16 %v150_v32  ;;  %v1194_v47 = vadd.f32 %v1066_v35, %v739_v38  ;;  %v863_v48 = vadd.f32 %v735_v41, %v410_v33  ;;  %v143_v36 = vld [vmem:[#allocation7 + $0x198] sm:$0xff] }
  0xa6   :  { %1476 = vmatpush.xpose.msrb.mxu3 %v1320_v40  ;;  %v597_v49 = vunpack.c.l.bf16 %v475_v37  ;;  %v1052_v50 = vunpack.c.l.bf16 %v930_v39  ;;  %v728_v51 = vmul.f32 %v1770_v6, %v599_v44  ;;  %v1183_v52 = vmul.f32 %v1772_v11, %v1054_v45  ;;  %v468_v45 = vld [vmem:[#allocation7 + $0x398] sm:$0xff] }
  0xa7   :  { %v401_v53 = vmul.f32 %v1768_v1, %v272_v46  ;;  %v275_v54 = vunpack.c.h.bf16 %v151_v21  ;;  %1371 = vmatpush.xpose.msra.mxu1 %v1194_v47  ;;  %v1318_v55 = vadd.f32 %v1190_v42, %v863_v48  ;;  %v600_v58 = vunpack.c.h.bf16 %v476_v30  ;;  %v923_v46 = vld [vmem:[#allocation7 + $0x598] sm:$0xff]  ;;  %v142_v47 = vld [vmem:[#allocation7 + $0x190] sm:$0xff] }
  0xa8   :  { %v726_v56 = vmul.f32 %v1770_v6, %v597_v49  ;;  %v1181_v57 = vmul.f32 %v1772_v11, %v1052_v50  ;;  %v856_v60 = vadd.f32 %v728_v51, %v403_v43  ;;  %v1055_v62 = vunpack.c.h.bf16 %v931_v31 }
  0xa9   :  { %v404_v61 = vmul.f32 %v1768_v1, %v275_v54  ;;  %v273_v63 = vunpack.c.h.bf16 %v150_v32  ;;  %v729_v2 = vmul.f32 %v1770_v6, %v600_v58  ;;  %v598_v3 = vunpack.c.h.bf16 %v475_v37 }
  0xaa   :  { %v854_v0 = vadd.f32 %v726_v56, %v401_v53  ;;  %v1053_v4 = vunpack.c.h.bf16 %v930_v39  ;;  %v1311_v9 = vadd.f32 %v1183_v52, %v856_v60  ;;  %v1184_v10 = vmul.f32 %v1772_v11, %v1055_v62  ;;  %v467_v52 = vld [vmem:[#allocation7 + $0x390] sm:$0xff] }
  0xab   :  { %1436 = vmatpush.xpose.msrb.mxu1 %v1318_v55  ;;  %v402_v12 = vmul.f32 %v1768_v1, %v273_v63  ;;  %v266_v13 = vunpack.c.l.bf16 %v147_v59  ;;  %v857_v18 = vadd.f32 %v729_v2, %v404_v61  ;;  %v727_v19 = vmul.f32 %v1770_v6, %v598_v3  ;;  %v922_v53 = vld [vmem:[#allocation7 + $0x590] sm:$0xff] }
  0xac   :  { %v1309_v16 = vadd.f32 %v1181_v57, %v854_v0  ;;  %v1182_v17 = vmul.f32 %v1772_v11, %v1053_v4  ;;  %1457 = vmatpush.xpose.msrb.mxu2 %v1311_v9  ;;  %v591_v21 = vunpack.c.l.bf16 %v472_v5  ;;  %v1046_v22 = vunpack.c.l.bf16 %v927_v7 }
  0xad   :  { %v395_v20 = vmul.f32 %v1768_v1, %v266_v13  ;;  %v264_v23 = vunpack.c.l.bf16 %v146_v8  ;;  %v1312_v24 = vadd.f32 %v1184_v10, %v857_v18  ;;  %v855_v25 = vadd.f32 %v727_v19, %v402_v12  ;;  %v139_v13 = vld [vmem:[#allocation7 + $0x178] sm:$0xff] }
  0xae   :  { %1417 = vmatpush.xpose.msrb.mxu0 %v1309_v16  ;;  %v589_v26 = vunpack.c.l.bf16 %v471_v14  ;;  %v1044_v27 = vunpack.c.l.bf16 %v926_v15  ;;  %v720_v28 = vmul.f32 %v1770_v6, %v591_v21  ;;  %v1175_v29 = vmul.f32 %v1772_v11, %v1046_v22  ;;  %v464_v22 = vld [vmem:[#allocation7 + $0x378] sm:$0xff] }
  0xaf   :  { %v393_v30 = vmul.f32 %v1768_v1, %v264_v23  ;;  %v267_v31 = vunpack.c.h.bf16 %v147_v59  ;;  %1477 = vmatpush.xpose.msrb.mxu3 %v1312_v24  ;;  %v1310_v32 = vadd.f32 %v1182_v17, %v855_v25  ;;  %v592_v33 = vunpack.c.h.bf16 %v472_v5  ;;  %v919_v23 = vld [vmem:[#allocation7 + $0x578] sm:$0xff]  ;;  %v138_v24 = vld [vmem:[#allocation7 + $0x170] sm:$0xff] }
  0xb0   :  { %v718_v34 = vmul.f32 %v1770_v6, %v589_v26  ;;  %v1173_v35 = vmul.f32 %v1772_v11, %v1044_v27  ;;  %v848_v37 = vadd.f32 %v720_v28, %v395_v20  ;;  %v1047_v40 = vunpack.c.h.bf16 %v927_v7 }
  0xb1   :  { %v396_v39 = vmul.f32 %v1768_v1, %v267_v31  ;;  %v265_v38 = vunpack.c.h.bf16 %v146_v8  ;;  %1437 = vmatpush.xpose.msrb.mxu1 %v1310_v32  ;;  %v721_v42 = vmul.f32 %v1770_v6, %v592_v33  ;;  %v590_v43 = vunpack.c.h.bf16 %v471_v14 }
  0xb2   :  { %v846_v41 = vadd.f32 %v718_v34, %v393_v30  ;;  %v1045_v44 = vunpack.c.h.bf16 %v926_v15  ;;  %v1303_v48 = vadd.f32 %v1175_v29, %v848_v37  ;;  %v1176_v49 = vmul.f32 %v1772_v11, %v1047_v40  ;;  %v463_v29 = vld [vmem:[#allocation7 + $0x370] sm:$0xff] }
  0xb3   :  { %v394_v50 = vmul.f32 %v1768_v1, %v265_v38  ;;  %v258_v51 = vunpack.c.l.bf16 %v143_v36  ;;  %v849_v55 = vadd.f32 %v721_v42, %v396_v39  ;;  %v719_v56 = vmul.f32 %v1770_v6, %v590_v43  ;;  %v918_v30 = vld [vmem:[#allocation7 + $0x570] sm:$0xff] }
  0xb4   :  { %v1301_v54 = vadd.f32 %v1173_v35, %v846_v41  ;;  %v1174_v57 = vmul.f32 %v1772_v11, %v1045_v44  ;;  %1458 = vmatpush.xpose.msrb.mxu2 %v1303_v48  ;;  %v583_v59 = vunpack.c.l.bf16 %v468_v45  ;;  %v1038_v60 = vunpack.c.l.bf16 %v923_v46 }
  0xb5   :  { %v387_v58 = vmul.f32 %v1768_v1, %v258_v51  ;;  %v256_v61 = vunpack.c.l.bf16 %v142_v47  ;;  %v1304_v62 = vadd.f32 %v1176_v49, %v849_v55  ;;  %v847_v63 = vadd.f32 %v719_v56, %v394_v50  ;;  %v135_v51 = vld [vmem:[#allocation7 + $0x158] sm:$0xff] }
  0xb6   :  { %1418 = vmatpush.xpose.msrb.mxu0 %v1301_v54  ;;  %v581_v0 = vunpack.c.l.bf16 %v467_v52  ;;  %v1036_v2 = vunpack.c.l.bf16 %v922_v53  ;;  %v712_v3 = vmul.f32 %v1770_v6, %v583_v59  ;;  %v1167_v4 = vmul.f32 %v1772_v11, %v1038_v60  ;;  %v460_v60 = vld [vmem:[#allocation7 + $0x358] sm:$0xff] }
  0xb7   :  { %v385_v5 = vmul.f32 %v1768_v1, %v256_v61  ;;  %v259_v7 = vunpack.c.h.bf16 %v143_v36  ;;  %1478 = vmatpush.xpose.msrb.mxu3 %v1304_v62  ;;  %v1302_v8 = vadd.f32 %v1174_v57, %v847_v63  ;;  %v584_v12 = vunpack.c.h.bf16 %v468_v45  ;;  %v915_v61 = vld [vmem:[#allocation7 + $0x558] sm:$0xff]  ;;  %v134_v62 = vld [vmem:[#allocation7 + $0x150] sm:$0xff] }
  0xb8   :  { %v710_v9 = vmul.f32 %v1770_v6, %v581_v0  ;;  %v1165_v10 = vmul.f32 %v1772_v11, %v1036_v2  ;;  %v840_v14 = vadd.f32 %v712_v3, %v387_v58  ;;  %v1039_v16 = vunpack.c.h.bf16 %v923_v46 }
  0xb9   :  { %v388_v15 = vmul.f32 %v1768_v1, %v259_v7  ;;  %v257_v18 = vunpack.c.h.bf16 %v142_v47  ;;  %1438 = vmatpush.xpose.msrb.mxu1 %v1302_v8  ;;  %v713_v17 = vmul.f32 %v1770_v6, %v584_v12  ;;  %v582_v20 = vunpack.c.h.bf16 %v467_v52 }
  0xba   :  { %v838_v19 = vadd.f32 %v710_v9, %v385_v5  ;;  %v1037_v21 = vunpack.c.h.bf16 %v922_v53  ;;  %v1295_v25 = vadd.f32 %v1167_v4, %v840_v14  ;;  %v1168_v26 = vmul.f32 %v1772_v11, %v1039_v16  ;;  %v459_v4 = vld [vmem:[#allocation7 + $0x350] sm:$0xff] }
  0xbb   :  { %v386_v27 = vmul.f32 %v1768_v1, %v257_v18  ;;  %v250_v28 = vunpack.c.l.bf16 %v139_v13  ;;  %v841_v32 = vadd.f32 %v713_v17, %v388_v15  ;;  %v711_v34 = vmul.f32 %v1770_v6, %v582_v20  ;;  %v914_v5 = vld [vmem:[#allocation7 + $0x550] sm:$0xff] }
  0xbc   :  { %v1293_v31 = vadd.f32 %v1165_v10, %v838_v19  ;;  %v1166_v35 = vmul.f32 %v1772_v11, %v1037_v21  ;;  %1459 = vmatpush.xpose.msrb.mxu2 %v1295_v25  ;;  %v575_v36 = vunpack.c.l.bf16 %v464_v22  ;;  %v1030_v37 = vunpack.c.l.bf16 %v919_v23 }
  0xbd   :  { %v379_v33 = vmul.f32 %v1768_v1, %v250_v28  ;;  %v248_v39 = vunpack.c.l.bf16 %v138_v24  ;;  %v1296_v40 = vadd.f32 %v1168_v26, %v841_v32  ;;  %v839_v38 = vadd.f32 %v711_v34, %v386_v27  ;;  %v131_v28 = vld [vmem:[#allocation7 + $0x138] sm:$0xff] }
  0xbe   :  { %1419 = vmatpush.xpose.msrb.mxu0 %v1293_v31  ;;  %v573_v41 = vunpack.c.l.bf16 %v463_v29  ;;  %v1028_v42 = vunpack.c.l.bf16 %v918_v30  ;;  %v704_v43 = vmul.f32 %v1770_v6, %v575_v36  ;;  %v1159_v44 = vmul.f32 %v1772_v11, %v1030_v37  ;;  %v456_v37 = vld [vmem:[#allocation7 + $0x338] sm:$0xff] }
  0xbf   :  { %v377_v45 = vmul.f32 %v1768_v1, %v248_v39  ;;  %v251_v46 = vunpack.c.h.bf16 %v139_v13  ;;  %1479 = vmatpush.xpose.msrb.mxu3 %v1296_v40  ;;  %v1294_v47 = vadd.f32 %v1166_v35, %v839_v38  ;;  %v576_v50 = vunpack.c.h.bf16 %v464_v22  ;;  %v911_v39 = vld [vmem:[#allocation7 + $0x538] sm:$0xff]  ;;  %v130_v40 = vld [vmem:[#allocation7 + $0x130] sm:$0xff] }
  0xc0   :  { %v702_v48 = vmul.f32 %v1770_v6, %v573_v41  ;;  %v1157_v49 = vmul.f32 %v1772_v11, %v1028_v42  ;;  %v832_v52 = vadd.f32 %v704_v43, %v379_v33  ;;  %v1031_v54 = vunpack.c.h.bf16 %v919_v23 }
  0xc1   :  { %v380_v53 = vmul.f32 %v1768_v1, %v251_v46  ;;  %v249_v55 = vunpack.c.h.bf16 %v138_v24  ;;  %1439 = vmatpush.xpose.msrb.mxu1 %v1294_v47  ;;  %v705_v57 = vmul.f32 %v1770_v6, %v576_v50  ;;  %v574_v58 = vunpack.c.h.bf16 %v463_v29 }
  0xc2   :  { %v830_v56 = vadd.f32 %v702_v48, %v377_v45  ;;  %v1029_v59 = vunpack.c.h.bf16 %v918_v30  ;;  %v1287_v63 = vadd.f32 %v1159_v44, %v832_v52  ;;  %v1160_v0 = vmul.f32 %v1772_v11, %v1031_v54  ;;  %v455_v44 = vld [vmem:[#allocation7 + $0x330] sm:$0xff] }
  0xc3   :  { %v378_v2 = vmul.f32 %v1768_v1, %v249_v55  ;;  %v242_v3 = vunpack.c.l.bf16 %v135_v51  ;;  %v833_v8 = vadd.f32 %v705_v57, %v380_v53  ;;  %v703_v9 = vmul.f32 %v1770_v6, %v574_v58  ;;  %v910_v45 = vld [vmem:[#allocation7 + $0x530] sm:$0xff] }
  0xc4   :  { %v1285_v7 = vadd.f32 %v1157_v49, %v830_v56  ;;  %v1158_v10 = vmul.f32 %v1772_v11, %v1029_v59  ;;  %1460 = vmatpush.xpose.msrb.mxu2 %v1287_v63  ;;  %v567_v13 = vunpack.c.l.bf16 %v460_v60  ;;  %v1022_v14 = vunpack.c.l.bf16 %v915_v61 }
  0xc5   :  { %v371_v12 = vmul.f32 %v1768_v1, %v242_v3  ;;  %v240_v15 = vunpack.c.l.bf16 %v134_v62  ;;  %v1288_v16 = vadd.f32 %v1160_v0, %v833_v8  ;;  %v831_v18 = vadd.f32 %v703_v9, %v378_v2  ;;  %v127_v3 = vld [vmem:[#allocation7 + $0x118] sm:$0xff] }
  0xc6   :  { %1420 = vmatpush.xpose.msrb.mxu0 %v1285_v7  ;;  %v565_v19 = vunpack.c.l.bf16 %v459_v4  ;;  %v1020_v17 = vunpack.c.l.bf16 %v914_v5  ;;  %v696_v20 = vmul.f32 %v1770_v6, %v567_v13  ;;  %v1151_v21 = vmul.f32 %v1772_v11, %v1022_v14  ;;  %v452_v14 = vld [vmem:[#allocation7 + $0x318] sm:$0xff] }
  0xc7   :  { %v369_v22 = vmul.f32 %v1768_v1, %v240_v15  ;;  %v243_v23 = vunpack.c.h.bf16 %v135_v51  ;;  %1480 = vmatpush.xpose.msrb.mxu3 %v1288_v16  ;;  %v1286_v24 = vadd.f32 %v1158_v10, %v831_v18  ;;  %v568_v27 = vunpack.c.h.bf16 %v460_v60  ;;  %v907_v15 = vld [vmem:[#allocation7 + $0x518] sm:$0xff]  ;;  %v126_v16 = vld [vmem:[#allocation7 + $0x110] sm:$0xff] }
  0xc8   :  { %v694_v25 = vmul.f32 %v1770_v6, %v565_v19  ;;  %v1149_v26 = vmul.f32 %v1772_v11, %v1020_v17  ;;  %v824_v29 = vadd.f32 %v696_v20, %v371_v12  ;;  %v1023_v31 = vunpack.c.h.bf16 %v915_v61 }
  0xc9   :  { %v372_v30 = vmul.f32 %v1768_v1, %v243_v23  ;;  %v241_v32 = vunpack.c.h.bf16 %v134_v62  ;;  %1440 = vmatpush.xpose.msrb.mxu1 %v1286_v24  ;;  %v697_v35 = vmul.f32 %v1770_v6, %v568_v27  ;;  %v566_v33 = vunpack.c.h.bf16 %v459_v4 }
  0xca   :  { %v822_v34 = vadd.f32 %v694_v25, %v369_v22  ;;  %v1021_v36 = vunpack.c.h.bf16 %v914_v5  ;;  %v1279_v38 = vadd.f32 %v1151_v21, %v824_v29  ;;  %v1152_v41 = vmul.f32 %v1772_v11, %v1023_v31  ;;  %v451_v21 = vld [vmem:[#allocation7 + $0x310] sm:$0xff] }
  0xcb   :  { %v370_v42 = vmul.f32 %v1768_v1, %v241_v32  ;;  %v234_v43 = vunpack.c.l.bf16 %v131_v28  ;;  %v825_v47 = vadd.f32 %v697_v35, %v372_v30  ;;  %v695_v48 = vmul.f32 %v1770_v6, %v566_v33  ;;  %v906_v22 = vld [vmem:[#allocation7 + $0x510] sm:$0xff] }
  0xcc   :  { %v1277_v46 = vadd.f32 %v1149_v26, %v822_v34  ;;  %v1150_v49 = vmul.f32 %v1772_v11, %v1021_v36  ;;  %1461 = vmatpush.xpose.msrb.mxu2 %v1279_v38  ;;  %v559_v51 = vunpack.c.l.bf16 %v456_v37  ;;  %v1014_v52 = vunpack.c.l.bf16 %v911_v39 }
  0xcd   :  { %v363_v50 = vmul.f32 %v1768_v1, %v234_v43  ;;  %v232_v53 = vunpack.c.l.bf16 %v130_v40  ;;  %v1280_v54 = vadd.f32 %v1152_v41, %v825_v47  ;;  %v823_v55 = vadd.f32 %v695_v48, %v370_v42  ;;  %v123_v43 = vld [vmem:[#allocation7 + $0xf8] sm:$0xff] }
  0xce   :  { %1421 = vmatpush.xpose.msrb.mxu0 %v1277_v46  ;;  %v557_v56 = vunpack.c.l.bf16 %v455_v44  ;;  %v1012_v57 = vunpack.c.l.bf16 %v910_v45  ;;  %v688_v58 = vmul.f32 %v1770_v6, %v559_v51  ;;  %v1143_v59 = vmul.f32 %v1772_v11, %v1014_v52  ;;  %v448_v52 = vld [vmem:[#allocation7 + $0x2f8] sm:$0xff] }
  0xcf   :  { %v361_v60 = vmul.f32 %v1768_v1, %v232_v53  ;;  %v235_v61 = vunpack.c.h.bf16 %v131_v28  ;;  %1481 = vmatpush.xpose.msrb.mxu3 %v1280_v54  ;;  %v1278_v62 = vadd.f32 %v1150_v49, %v823_v55  ;;  %v560_v2 = vunpack.c.h.bf16 %v456_v37  ;;  %v903_v53 = vld [vmem:[#allocation7 + $0x4f8] sm:$0xff]  ;;  %v122_v54 = vld [vmem:[#allocation7 + $0xf0] sm:$0xff] }
  0xd0   :  { %v686_v63 = vmul.f32 %v1770_v6, %v557_v56  ;;  %v1141_v0 = vmul.f32 %v1772_v11, %v1012_v57  ;;  %v816_v4 = vadd.f32 %v688_v58, %v363_v50  ;;  %v1015_v7 = vunpack.c.h.bf16 %v911_v39 }
  0xd1   :  { %v364_v5 = vmul.f32 %v1768_v1, %v235_v61  ;;  %v233_v8 = vunpack.c.h.bf16 %v130_v40  ;;  %1441 = vmatpush.xpose.msrb.mxu1 %v1278_v62  ;;  %v689_v10 = vmul.f32 %v1770_v6, %v560_v2  ;;  %v558_v12 = vunpack.c.h.bf16 %v455_v44 }
  0xd2   :  { %v814_v9 = vadd.f32 %v686_v63, %v361_v60  ;;  %v1013_v13 = vunpack.c.h.bf16 %v910_v45  ;;  %v1271_v18 = vadd.f32 %v1143_v59, %v816_v4  ;;  %v1144_v19 = vmul.f32 %v1772_v11, %v1015_v7  ;;  %v447_v59 = vld [vmem:[#allocation7 + $0x2f0] sm:$0xff] }
  0xd3   :  { %v362_v17 = vmul.f32 %v1768_v1, %v233_v8  ;;  %v226_v20 = vunpack.c.l.bf16 %v127_v3  ;;  %v817_v24 = vadd.f32 %v689_v10, %v364_v5  ;;  %v687_v25 = vmul.f32 %v1770_v6, %v558_v12  ;;  %v902_v60 = vld [vmem:[#allocation7 + $0x4f0] sm:$0xff] }
  0xd4   :  { %v1269_v23 = vadd.f32 %v1141_v0, %v814_v9  ;;  %v1142_v26 = vmul.f32 %v1772_v11, %v1013_v13  ;;  %1462 = vmatpush.xpose.msrb.mxu2 %v1271_v18  ;;  %v551_v28 = vunpack.c.l.bf16 %v452_v14  ;;  %v1006_v29 = vunpack.c.l.bf16 %v907_v15 }
  0xd5   :  { %v355_v27 = vmul.f32 %v1768_v1, %v226_v20  ;;  %v224_v30 = vunpack.c.l.bf16 %v126_v16  ;;  %v1272_v31 = vadd.f32 %v1144_v19, %v817_v24  ;;  %v815_v32 = vadd.f32 %v687_v25, %v362_v17  ;;  %v119_v20 = vld [vmem:[#allocation7 + $0xd8] sm:$0xff] }
  0xd6   :  { %1422 = vmatpush.xpose.msrb.mxu0 %v1269_v23  ;;  %v549_v34 = vunpack.c.l.bf16 %v451_v21  ;;  %v1004_v35 = vunpack.c.l.bf16 %v906_v22  ;;  %v680_v33 = vmul.f32 %v1770_v6, %v551_v28  ;;  %v1135_v36 = vmul.f32 %v1772_v11, %v1006_v29  ;;  %v444_v29 = vld [vmem:[#allocation7 + $0x2d8] sm:$0xff] }
  0xd7   :  { %v353_v37 = vmul.f32 %v1768_v1, %v224_v30  ;;  %v227_v39 = vunpack.c.h.bf16 %v127_v3  ;;  %1482 = vmatpush.xpose.msrb.mxu3 %v1272_v31  ;;  %v1270_v40 = vadd.f32 %v1142_v26, %v815_v32  ;;  %v552_v42 = vunpack.c.h.bf16 %v452_v14  ;;  %v899_v30 = vld [vmem:[#allocation7 + $0x4d8] sm:$0xff]  ;;  %v118_v31 = vld [vmem:[#allocation7 + $0xd0] sm:$0xff] }
  0xd8   :  { %v678_v38 = vmul.f32 %v1770_v6, %v549_v34  ;;  %v1133_v41 = vmul.f32 %v1772_v11, %v1004_v35  ;;  %v808_v44 = vadd.f32 %v680_v33, %v355_v27  ;;  %v1007_v46 = vunpack.c.h.bf16 %v907_v15 }
  0xd9   :  { %v356_v45 = vmul.f32 %v1768_v1, %v227_v39  ;;  %v225_v47 = vunpack.c.h.bf16 %v126_v16  ;;  %1442 = vmatpush.xpose.msrb.mxu1 %v1270_v40  ;;  %v681_v49 = vmul.f32 %v1770_v6, %v552_v42  ;;  %v550_v50 = vunpack.c.h.bf16 %v451_v21 }
  0xda   :  { %v806_v48 = vadd.f32 %v678_v38, %v353_v37  ;;  %v1005_v51 = vunpack.c.h.bf16 %v906_v22  ;;  %v1263_v55 = vadd.f32 %v1135_v36, %v808_v44  ;;  %v1136_v56 = vmul.f32 %v1772_v11, %v1007_v46  ;;  %v443_v36 = vld [vmem:[#allocation7 + $0x2d0] sm:$0xff] }
  0xdb   :  { %v354_v57 = vmul.f32 %v1768_v1, %v225_v47  ;;  %v218_v58 = vunpack.c.l.bf16 %v123_v43  ;;  %v809_v62 = vadd.f32 %v681_v49, %v356_v45  ;;  %v679_v63 = vmul.f32 %v1770_v6, %v550_v50  ;;  %v898_v37 = vld [vmem:[#allocation7 + $0x4d0] sm:$0xff] }
  0xdc   :  { %v1261_v61 = vadd.f32 %v1133_v41, %v806_v48  ;;  %v1134_v0 = vmul.f32 %v1772_v11, %v1005_v51  ;;  %1463 = vmatpush.xpose.msrb.mxu2 %v1263_v55  ;;  %v543_v3 = vunpack.c.l.bf16 %v448_v52  ;;  %v998_v4 = vunpack.c.l.bf16 %v903_v53 }
  0xdd   :  { %v347_v2 = vmul.f32 %v1768_v1, %v218_v58  ;;  %v216_v5 = vunpack.c.l.bf16 %v122_v54  ;;  %v1264_v7 = vadd.f32 %v1136_v56, %v809_v62  ;;  %v807_v8 = vadd.f32 %v679_v63, %v354_v57  ;;  %v115_v58 = vld [vmem:[#allocation7 + $0xb8] sm:$0xff] }
  0xde   :  { %1423 = vmatpush.xpose.msrb.mxu0 %v1261_v61  ;;  %v541_v9 = vunpack.c.l.bf16 %v447_v59  ;;  %v996_v10 = vunpack.c.l.bf16 %v902_v60  ;;  %v672_v12 = vmul.f32 %v1770_v6, %v543_v3  ;;  %v1127_v13 = vmul.f32 %v1772_v11, %v998_v4  ;;  %v440_v4 = vld [vmem:[#allocation7 + $0x2b8] sm:$0xff] }
  0xdf   :  { %v345_v14 = vmul.f32 %v1768_v1, %v216_v5  ;;  %v219_v15 = vunpack.c.h.bf16 %v123_v43  ;;  %1483 = vmatpush.xpose.msrb.mxu3 %v1264_v7  ;;  %v1262_v16 = vadd.f32 %v1134_v0, %v807_v8  ;;  %v544_v17 = vunpack.c.h.bf16 %v448_v52  ;;  %v895_v5 = vld [vmem:[#allocation7 + $0x4b8] sm:$0xff]  ;;  %v114_v7 = vld [vmem:[#allocation7 + $0xb0] sm:$0xff] }
  0xe0   :  { %v670_v18 = vmul.f32 %v1770_v6, %v541_v9  ;;  %v1125_v19 = vmul.f32 %v1772_v11, %v996_v10  ;;  %v800_v21 = vadd.f32 %v672_v12, %v347_v2  ;;  %v999_v23 = vunpack.c.h.bf16 %v903_v53 }
  0xe1   :  { %v348_v22 = vmul.f32 %v1768_v1, %v219_v15  ;;  %v217_v24 = vunpack.c.h.bf16 %v122_v54  ;;  %1443 = vmatpush.xpose.msrb.mxu1 %v1262_v16  ;;  %v673_v26 = vmul.f32 %v1770_v6, %v544_v17  ;;  %v542_v27 = vunpack.c.h.bf16 %v447_v59 }
  0xe2   :  { %v798_v25 = vadd.f32 %v670_v18, %v345_v14  ;;  %v997_v28 = vunpack.c.h.bf16 %v902_v60  ;;  %v1255_v32 = vadd.f32 %v1127_v13, %v800_v21  ;;  %v1128_v34 = vmul.f32 %v1772_v11, %v999_v23  ;;  %v439_v13 = vld [vmem:[#allocation7 + $0x2b0] sm:$0xff] }
  0xe3   :  { %v346_v35 = vmul.f32 %v1768_v1, %v217_v24  ;;  %v210_v33 = vunpack.c.l.bf16 %v119_v20  ;;  %v801_v40 = vadd.f32 %v673_v26, %v348_v22  ;;  %v671_v38 = vmul.f32 %v1770_v6, %v542_v27  ;;  %v894_v14 = vld [vmem:[#allocation7 + $0x4b0] sm:$0xff] }
  0xe4   :  { %v1253_v39 = vadd.f32 %v1125_v19, %v798_v25  ;;  %v1126_v41 = vmul.f32 %v1772_v11, %v997_v28  ;;  %1464 = vmatpush.xpose.msrb.mxu2 %v1255_v32  ;;  %v535_v43 = vunpack.c.l.bf16 %v444_v29  ;;  %v990_v44 = vunpack.c.l.bf16 %v899_v30 }
  0xe5   :  { %v339_v42 = vmul.f32 %v1768_v1, %v210_v33  ;;  %v208_v45 = vunpack.c.l.bf16 %v118_v31  ;;  %v1256_v46 = vadd.f32 %v1128_v34, %v801_v40  ;;  %v799_v47 = vadd.f32 %v671_v38, %v346_v35  ;;  %v111_v33 = vld [vmem:[#allocation7 + $0x98] sm:$0xff] }
  0xe6   :  { %1424 = vmatpush.xpose.msrb.mxu0 %v1253_v39  ;;  %v533_v48 = vunpack.c.l.bf16 %v443_v36  ;;  %v988_v49 = vunpack.c.l.bf16 %v898_v37  ;;  %v664_v50 = vmul.f32 %v1770_v6, %v535_v43  ;;  %v1119_v51 = vmul.f32 %v1772_v11, %v990_v44 }
  0xe7   :  { %v337_v52 = vmul.f32 %v1768_v1, %v208_v45  ;;  %v211_v53 = vunpack.c.h.bf16 %v119_v20  ;;  %1484 = vmatpush.xpose.msrb.mxu3 %v1256_v46  ;;  %v1254_v54 = vadd.f32 %v1126_v41, %v799_v47  ;;  %v536_v57 = vunpack.c.h.bf16 %v444_v29  ;;  %v436_v45 = vld [vmem:[#allocation7 + $0x298] sm:$0xff]  ;;  %v110_v47 = vld [vmem:[#allocation7 + $0x90] sm:$0xff] }
  0xe8   :  { %v662_v55 = vmul.f32 %v1770_v6, %v533_v48  ;;  %v1117_v56 = vmul.f32 %v1772_v11, %v988_v49  ;;  %v792_v59 = vadd.f32 %v664_v50, %v339_v42  ;;  %v991_v61 = vunpack.c.h.bf16 %v899_v30  ;;  %v891_v46 = vld [vmem:[#allocation7 + $0x498] sm:$0xff] }
  0xe9   :  { %v340_v60 = vmul.f32 %v1768_v1, %v211_v53  ;;  %v209_v62 = vunpack.c.h.bf16 %v118_v31  ;;  %1444 = vmatpush.xpose.msrb.mxu1 %v1254_v54  ;;  %v665_v0 = vmul.f32 %v1770_v6, %v536_v57  ;;  %v534_v2 = vunpack.c.h.bf16 %v443_v36  ;;  %v1327_v36 = vld [vmem:[#allocation4 + $0x10] sm:$0xff] }
  0xea   :  { %v790_v63 = vadd.f32 %v662_v55, %v337_v52  ;;  %v989_v3 = vunpack.c.h.bf16 %v898_v37  ;;  %v1247_v8 = vadd.f32 %v1119_v51, %v792_v59  ;;  %v1120_v9 = vmul.f32 %v1772_v11, %v991_v61  ;;  %1392 = vmatmul.f32.vlgmr.msra.gmra.mxu2 %v1327_v36  ;;  %v435_v52 = vld [vmem:[#allocation7 + $0x290] sm:$0xff] }
  0xeb   :  { %v338_v10 = vmul.f32 %v1768_v1, %v209_v62  ;;  %v202_v12 = vunpack.c.l.bf16 %v115_v58  ;;  %v793_v16 = vadd.f32 %v665_v0, %v340_v60  ;;  %v663_v18 = vmul.f32 %v1770_v6, %v534_v2  ;;  %v890_v53 = vld [vmem:[#allocation7 + $0x490] sm:$0xff]  ;;  %v1325_v62 = vld [vmem:[#allocation4] sm:$0xff] }
  0xec   :  { %v1245_v15 = vadd.f32 %v1117_v56, %v790_v63  ;;  %v1118_v19 = vmul.f32 %v1772_v11, %v989_v3  ;;  %1465 = vmatpush.xpose.msrb.mxu2 %v1247_v8  ;;  %v527_v20 = vunpack.c.l.bf16 %v440_v4  ;;  %v982_v21 = vunpack.c.l.bf16 %v895_v5  ;;  %v1328_v63 = vld [vmem:[#allocation4 + $0x18] sm:$0xff]  ;;  %1352 = vmatmul.f32.vlgmr.msra.gmra.mxu0 %v1325_v62 }
  0xed   :  { %v331_v17 = vmul.f32 %v1768_v1, %v202_v12  ;;  %v200_v22 = vunpack.c.l.bf16 %v114_v7  ;;  %v1248_v23 = vadd.f32 %v1120_v9, %v793_v16  ;;  %v791_v24 = vadd.f32 %v663_v18, %v338_v10  ;;  %1412 = vmatmul.f32.vlgmr.msra.gmra.mxu3 %v1328_v63  ;;  %v1326_v16 = vld [vmem:[#allocation4 + $0x8] sm:$0xff]  ;;  %v428_v63 = vld [vmem:[#allocation7 + $0x258] sm:$0xff] }
  0xee   :  { %1425 = vmatpush.xpose.msrb.mxu0 %v1245_v15  ;;  %v525_v25 = vunpack.c.l.bf16 %v439_v13  ;;  %v980_v26 = vunpack.c.l.bf16 %v894_v14  ;;  %v656_v27 = vmul.f32 %v1770_v6, %v527_v20  ;;  %v1111_v28 = vmul.f32 %v1772_v11, %v982_v21  ;;  %v107_v15 = vld [vmem:[#allocation7 + $0x78] sm:$0xff]  ;;  %1372 = vmatmul.f32.vlgmr.msra.gmra.mxu1 %v1326_v16 }
  0xef   :  { %v329_v29 = vmul.f32 %v1768_v1, %v200_v22  ;;  %v203_v30 = vunpack.c.h.bf16 %v115_v58  ;;  %1485 = vmatpush.xpose.msrb.mxu3 %v1248_v23  ;;  %v1246_v31 = vadd.f32 %v1118_v19, %v791_v24  ;;  %v528_v35 = vunpack.c.h.bf16 %v440_v4 }
  0xf0   :  { %v654_v32 = vmul.f32 %v1770_v6, %v525_v25  ;;  %v1109_v34 = vmul.f32 %v1772_v11, %v980_v26  ;;  %v784_v37 = vadd.f32 %v656_v27, %v331_v17  ;;  %v983_v40 = vunpack.c.h.bf16 %v895_v5  ;;  %v432_v25 = vld [vmem:[#allocation7 + $0x278] sm:$0xff]  ;;  %v106_v27 = vld [vmem:[#allocation7 + $0x70] sm:$0xff] }
  0xf1   :  { %v332_v39 = vmul.f32 %v1768_v1, %v203_v30  ;;  %v201_v38 = vunpack.c.h.bf16 %v114_v7  ;;  %1445 = vmatpush.xpose.msrb.mxu1 %v1246_v31  ;;  %v657_v42 = vmul.f32 %v1770_v6, %v528_v35  ;;  %v526_v43 = vunpack.c.h.bf16 %v439_v13  ;;  %v887_v26 = vld [vmem:[#allocation7 + $0x478] sm:$0xff] }
  0xf2   :  { %v782_v41 = vadd.f32 %v654_v32, %v329_v29  ;;  %v981_v44 = vunpack.c.h.bf16 %v894_v14  ;;  %v1239_v48 = vadd.f32 %v1111_v28, %v784_v37  ;;  %v1112_v49 = vmul.f32 %v1772_v11, %v983_v40  ;;  %v431_v32 = vld [vmem:[#allocation7 + $0x270] sm:$0xff] }
  0xf3   :  { %v330_v50 = vmul.f32 %v1768_v1, %v201_v38  ;;  %v194_v51 = vunpack.c.l.bf16 %v111_v33  ;;  %v785_v55 = vadd.f32 %v657_v42, %v332_v39  ;;  %v655_v56 = vmul.f32 %v1770_v6, %v526_v43 }
  0xf4   :  { %v1237_v54 = vadd.f32 %v1109_v34, %v782_v41  ;;  %v1110_v57 = vmul.f32 %v1772_v11, %v981_v44  ;;  %1466 = vmatpush.xpose.msrb.mxu2 %v1239_v48  ;;  %v519_v59 = vunpack.c.l.bf16 %v436_v45  ;;  %v974_v60 = vunpack.c.l.bf16 %v891_v46  ;;  %v886_v34 = vld [vmem:[#allocation7 + $0x470] sm:$0xff] }
  0xf5   :  { %v323_v58 = vmul.f32 %v1768_v1, %v194_v51  ;;  %v192_v61 = vunpack.c.l.bf16 %v110_v47  ;;  %v1240_v0 = vadd.f32 %v1112_v49, %v785_v55  ;;  %v783_v2 = vadd.f32 %v655_v56, %v330_v50 }
  0xf6   :  { %1426 = vmatpush.xpose.msrb.mxu0 %v1237_v54  ;;  %v517_v3 = vunpack.c.l.bf16 %v435_v52  ;;  %v972_v4 = vunpack.c.l.bf16 %v890_v53  ;;  %v648_v5 = vmul.f32 %v1770_v6, %v519_v59  ;;  %v1103_v7 = vmul.f32 %v1772_v11, %v974_v60  ;;  %v103_v54 = vld [vmem:[#allocation7 + $0x58] sm:$0xff] }
  0xf7   :  { %v321_v8 = vmul.f32 %v1768_v1, %v192_v61  ;;  %v195_v9 = vunpack.c.h.bf16 %v111_v33  ;;  %1486 = vmatpush.xpose.msrb.mxu3 %v1240_v0  ;;  %v1238_v10 = vadd.f32 %v1110_v57, %v783_v2  ;;  %v520_v14 = vunpack.c.h.bf16 %v436_v45  ;;  %v883_v0 = vld [vmem:[#allocation7 + $0x458] sm:$0xff]  ;;  %v102_v2 = vld [vmem:[#allocation7 + $0x50] sm:$0xff] }
  0xf8   :  { %v646_v12 = vmul.f32 %v1770_v6, %v517_v3  ;;  %v1101_v13 = vmul.f32 %v1772_v11, %v972_v4  ;;  %v776_v18 = vadd.f32 %v648_v5, %v323_v58  ;;  %v975_v17 = vunpack.c.h.bf16 %v891_v46 }
  0xf9   :  { %v324_v19 = vmul.f32 %v1768_v1, %v195_v9  ;;  %v193_v20 = vunpack.c.h.bf16 %v110_v47  ;;  %1446 = vmatpush.xpose.msrb.mxu1 %v1238_v10  ;;  %v649_v22 = vmul.f32 %v1770_v6, %v520_v14  ;;  %v518_v23 = vunpack.c.h.bf16 %v435_v52  ;;  %v882_v9 = vld [vmem:[#allocation7 + $0x450] sm:$0xff] }
  0xfa   :  { %v774_v21 = vadd.f32 %v646_v12, %v321_v8  ;;  %v973_v24 = vunpack.c.h.bf16 %v890_v53  ;;  %v1231_v28 = vadd.f32 %v1103_v7, %v776_v18  ;;  %v1104_v29 = vmul.f32 %v1772_v11, %v975_v17  ;;  %v427_v8 = vld [vmem:[#allocation7 + $0x250] sm:$0xff] }
  0xfb   :  { %v322_v30 = vmul.f32 %v1768_v1, %v193_v20  ;;  %v186_v31 = vunpack.c.l.bf16 %v107_v15  ;;  %v777_v33 = vadd.f32 %v649_v22, %v324_v19  ;;  %v647_v36 = vmul.f32 %v1770_v6, %v518_v23 }
  0xfc   :  { %v1229_v35 = vadd.f32 %v1101_v13, %v774_v21  ;;  %v1102_v37 = vmul.f32 %v1772_v11, %v973_v24  ;;  %1467 = vmatpush.xpose.msrb.mxu2 %v1231_v28  ;;  %v511_v40 = vunpack.c.l.bf16 %v432_v25  ;;  %v966_v38 = vunpack.c.l.bf16 %v887_v26 }
  0xfd   :  { %v315_v39 = vmul.f32 %v1768_v1, %v186_v31  ;;  %v184_v41 = vunpack.c.l.bf16 %v106_v27  ;;  %v1232_v42 = vadd.f32 %v1104_v29, %v777_v33  ;;  %v775_v43 = vadd.f32 %v647_v36, %v322_v30  ;;  %v99_v31 = vld [vmem:[#allocation7 + $0x38] sm:$0xff] }
  0xfe   :  { %1427 = vmatpush.xpose.msrb.mxu0 %v1229_v35  ;;  %v509_v44 = vunpack.c.l.bf16 %v431_v32  ;;  %v964_v45 = vunpack.c.l.bf16 %v886_v34  ;;  %v640_v46 = vmul.f32 %v1770_v6, %v511_v40  ;;  %v1095_v47 = vmul.f32 %v1772_v11, %v966_v38  ;;  %v424_v38 = vld [vmem:[#allocation7 + $0x238] sm:$0xff] }
  0xff   :  { %v313_v48 = vmul.f32 %v1768_v1, %v184_v41  ;;  %v187_v49 = vunpack.c.h.bf16 %v107_v15  ;;  %1487 = vmatpush.xpose.msrb.mxu3 %v1232_v42  ;;  %v1230_v50 = vadd.f32 %v1102_v37, %v775_v43  ;;  %v512_v53 = vunpack.c.h.bf16 %v432_v25  ;;  %v879_v41 = vld [vmem:[#allocation7 + $0x438] sm:$0xff]  ;;  %v98_v42 = vld [vmem:[#allocation7 + $0x30] sm:$0xff] }
 0x100   :  { %v638_v51 = vmul.f32 %v1770_v6, %v509_v44  ;;  %v1093_v52 = vmul.f32 %v1772_v11, %v964_v45  ;;  %v768_v55 = vadd.f32 %v640_v46, %v315_v39  ;;  %v967_v57 = vunpack.c.h.bf16 %v887_v26 }
 0x101   :  { %v316_v56 = vmul.f32 %v1768_v1, %v187_v49  ;;  %v185_v58 = vunpack.c.h.bf16 %v106_v27  ;;  %1447 = vmatpush.xpose.msrb.mxu1 %v1230_v50  ;;  %v641_v60 = vmul.f32 %v1770_v6, %v512_v53  ;;  %v510_v61 = vunpack.c.h.bf16 %v431_v32 }
 0x102   :  { %v766_v59 = vadd.f32 %v638_v51, %v313_v48  ;;  %v965_v62 = vunpack.c.h.bf16 %v886_v34  ;;  %v1223_v3 = vadd.f32 %v1095_v47, %v768_v55  ;;  %v1096_v4 = vmul.f32 %v1772_v11, %v967_v57  ;;  %v423_v47 = vld [vmem:[#allocation7 + $0x230] sm:$0xff] }
 0x103   :  { %v314_v5 = vmul.f32 %v1768_v1, %v185_v58  ;;  %v178_v7 = vunpack.c.l.bf16 %v103_v54  ;;  %v769_v12 = vadd.f32 %v641_v60, %v316_v56  ;;  %v639_v13 = vmul.f32 %v1770_v6, %v510_v61  ;;  %v878_v48 = vld [vmem:[#allocation7 + $0x430] sm:$0xff] }
 0x104   :  { %v1221_v10 = vadd.f32 %v1093_v52, %v766_v59  ;;  %v1094_v14 = vmul.f32 %v1772_v11, %v965_v62  ;;  %1468 = vmatpush.xpose.msrb.mxu2 %v1223_v3  ;;  %v503_v16 = vunpack.c.l.bf16 %v428_v63  ;;  %v958_v18 = vunpack.c.l.bf16 %v883_v0 }
 0x105   :  { %v307_v15 = vmul.f32 %v1768_v1, %v178_v7  ;;  %v176_v19 = vunpack.c.l.bf16 %v102_v2  ;;  %v1224_v17 = vadd.f32 %v1096_v4, %v769_v12  ;;  %v767_v20 = vadd.f32 %v639_v13, %v314_v5  ;;  %v95_v7 = vld [vmem:[#allocation7 + $0x18] sm:$0xff] }
 0x106   :  { %1428 = vmatpush.xpose.msrb.mxu0 %v1221_v10  ;;  %v501_v21 = vunpack.c.l.bf16 %v427_v8  ;;  %v956_v22 = vunpack.c.l.bf16 %v882_v9  ;;  %v632_v23 = vmul.f32 %v1770_v6, %v503_v16  ;;  %v1087_v24 = vmul.f32 %v1772_v11, %v958_v18  ;;  %v420_v18 = vld [vmem:[#allocation7 + $0x218] sm:$0xff] }
 0x107   :  { %v305_v25 = vmul.f32 %v1768_v1, %v176_v19  ;;  %v179_v26 = vunpack.c.h.bf16 %v103_v54  ;;  %1488 = vmatpush.xpose.msrb.mxu3 %v1224_v17  ;;  %v1222_v27 = vadd.f32 %v1094_v14, %v767_v20  ;;  %v504_v30 = vunpack.c.h.bf16 %v428_v63  ;;  %v875_v19 = vld [vmem:[#allocation7 + $0x418] sm:$0xff]  ;;  %v94_v17 = vld [vmem:[#allocation7 + $0x10] sm:$0xff] }
 0x108   :  { %v630_v28 = vmul.f32 %v1770_v6, %v501_v21  ;;  %v1085_v29 = vmul.f32 %v1772_v11, %v956_v22  ;;  %v760_v32 = vadd.f32 %v632_v23, %v307_v15  ;;  %v959_v35 = vunpack.c.h.bf16 %v883_v0 }
 0x109   :  { %v308_v34 = vmul.f32 %v1768_v1, %v179_v26  ;;  %v177_v33 = vunpack.c.h.bf16 %v102_v2  ;;  %1448 = vmatpush.xpose.msrb.mxu1 %v1222_v27  ;;  %v633_v37 = vmul.f32 %v1770_v6, %v504_v30  ;;  %v502_v39 = vunpack.c.h.bf16 %v427_v8 }
 0x10a   :  { %v758_v36 = vadd.f32 %v630_v28, %v305_v25  ;;  %v957_v40 = vunpack.c.h.bf16 %v882_v9  ;;  %v1215_v43 = vadd.f32 %v1087_v24, %v760_v32  ;;  %v1088_v44 = vmul.f32 %v1772_v11, %v959_v35  ;;  %v419_v24 = vld [vmem:[#allocation7 + $0x210] sm:$0xff] }
 0x10b   :  { %v306_v45 = vmul.f32 %v1768_v1, %v177_v33  ;;  %v170_v46 = vunpack.c.l.bf16 %v99_v31  ;;  %v761_v50 = vadd.f32 %v633_v37, %v308_v34  ;;  %v631_v51 = vmul.f32 %v1770_v6, %v502_v39  ;;  %v874_v25 = vld [vmem:[#allocation7 + $0x410] sm:$0xff] }
 0x10c   :  { %v1213_v49 = vadd.f32 %v1085_v29, %v758_v36  ;;  %v1086_v52 = vmul.f32 %v1772_v11, %v957_v40  ;;  %1469 = vmatpush.xpose.msrb.mxu2 %v1215_v43  ;;  %v495_v54 = vunpack.c.l.bf16 %v424_v38  ;;  %v950_v55 = vunpack.c.l.bf16 %v879_v41 }
 0x10d   :  { %v299_v53 = vmul.f32 %v1768_v1, %v170_v46  ;;  %v168_v56 = vunpack.c.l.bf16 %v98_v42  ;;  %v1216_v57 = vadd.f32 %v1088_v44, %v761_v50  ;;  %v759_v58 = vadd.f32 %v631_v51, %v306_v45 }
 0x10e   :  { %1429 = vmatpush.xpose.msrb.mxu0 %v1213_v49  ;;  %v493_v59 = vunpack.c.l.bf16 %v423_v47  ;;  %v948_v60 = vunpack.c.l.bf16 %v878_v48  ;;  %v624_v61 = vmul.f32 %v1770_v6, %v495_v54  ;;  %v1079_v62 = vmul.f32 %v1772_v11, %v950_v55 }
 0x10f   :  { %v297_v63 = vmul.f32 %v1768_v1, %v168_v56  ;;  %v171_v0 = vunpack.c.h.bf16 %v99_v31  ;;  %1489 = vmatpush.xpose.msrb.mxu3 %v1216_v57  ;;  %v1214_v2 = vadd.f32 %v1086_v52, %v759_v58  ;;  %v496_v5 = vunpack.c.h.bf16 %v424_v38 }
 0x110   :  { %v622_v3 = vmul.f32 %v1770_v6, %v493_v59  ;;  %v1077_v4 = vmul.f32 %v1772_v11, %v948_v60  ;;  %v752_v8 = vadd.f32 %v624_v61, %v299_v53  ;;  %v951_v10 = vunpack.c.h.bf16 %v879_v41  ;;  %v1331_v61 = vld [vmem:[#allocation4 + $0x30] sm:$0xff] }
 0x111   :  { %v300_v9 = vmul.f32 %v1768_v1, %v171_v0  ;;  %v169_v12 = vunpack.c.h.bf16 %v98_v42  ;;  %1449 = vmatpush.xpose.msrb.mxu1 %v1214_v2  ;;  %v625_v14 = vmul.f32 %v1770_v6, %v496_v5  ;;  %v494_v15 = vunpack.c.h.bf16 %v423_v47  ;;  %v1329_v0 = vld [vmem:[#allocation4 + $0x20] sm:$0xff] }
 0x112   :  { %v750_v13 = vadd.f32 %v622_v3, %v297_v63  ;;  %v949_v16 = vunpack.c.h.bf16 %v878_v48  ;;  %v1207_v20 = vadd.f32 %v1079_v62, %v752_v8  ;;  %v1080_v21 = vmul.f32 %v1772_v11, %v951_v10  ;;  %v1332_v3 = vld [vmem:[#allocation4 + $0x38] sm:$0xff]  ;;  %v413_v5 = vld [vmem:[#allocation9] sm:$0x1]  ;;  %v1548_v10 = vld [vmem:[#allocation10] sm:$0xff]  }
 0x113   :  { %v298_v22 = vmul.f32 %v1768_v1, %v169_v12  ;;  %v162_v23 = vunpack.c.l.bf16 %v95_v7  ;;  %v753_v27 = vadd.f32 %v625_v14, %v300_v9  ;;  %v623_v28 = vmul.f32 %v1770_v6, %v494_v15  ;;  %v1322_v12 = vld [vmem:[#allocation9 + $0x2] sm:$0x1] }
 0x114   :  { %v1205_v26 = vadd.f32 %v1077_v4, %v750_v13  ;;  %v1078_v29 = vmul.f32 %v1772_v11, %v949_v16  ;;  %1470 = vmatpush.xpose.msrb.mxu2 %v1207_v20  ;;  %v487_v31 = vunpack.c.l.bf16 %v420_v18  ;;  %v942_v32 = vunpack.c.l.bf16 %v875_v19  ;;  %v1330_v4 = vld [vmem:[#allocation4 + $0x28] sm:$0xff] }
 0x115   :  { %v291_v30 = vmul.f32 %v1768_v1, %v162_v23  ;;  %v160_v34 = vunpack.c.l.bf16 %v94_v17  ;;  %v1208_v35 = vadd.f32 %v1080_v21, %v753_v27  ;;  %v751_v33 = vadd.f32 %v623_v28, %v298_v22 }
 0x116   :  { %1430 = vmatpush.xpose.msrb.mxu0 %v1205_v26  ;;  %v485_v36 = vunpack.c.l.bf16 %v419_v24  ;;  %v940_v37 = vunpack.c.l.bf16 %v874_v25  ;;  %v616_v39 = vmul.f32 %v1770_v6, %v487_v31  ;;  %v1071_v40 = vmul.f32 %v1772_v11, %v942_v32  ;;  %v1563_v32 = vld [vmem:[%s2196_s5] ss:$0 sm:$0xff] }
 0x117   :  { %v289_v38 = vmul.f32 %v1768_v1, %v160_v34  ;;  %v163_v41 = vunpack.c.h.bf16 %v95_v7  ;;  %1490 = vmatpush.xpose.msrb.mxu3 %v1208_v35  ;;  %v1206_v42 = vadd.f32 %v1078_v29, %v751_v33  ;;  %v488_v45 = vunpack.c.h.bf16 %v420_v18  ;;  %v867_v7 = vld [vmem:[#allocation9 + $0x1] sm:$0x1] }
 0x118   :  { %v614_v43 = vmul.f32 %v1770_v6, %v485_v36  ;;  %v1069_v44 = vmul.f32 %v1772_v11, %v940_v37  ;;  %v744_v46 = vadd.f32 %v616_v39, %v291_v30  ;;  %v943_v48 = vunpack.c.h.bf16 %v875_v19 }
 0x119   :  { %v292_v47 = vmul.f32 %v1768_v1, %v163_v41  ;;  %v161_v49 = vunpack.c.h.bf16 %v94_v17  ;;  %1450 = vmatpush.xpose.msrb.mxu1 %v1206_v42  ;;  %v617_v51 = vmul.f32 %v1770_v6, %v488_v45  ;;  %v486_v52 = vunpack.c.h.bf16 %v419_v24 }
 0x11a   :  { %v742_v50 = vadd.f32 %v614_v43, %v289_v38  ;;  %v941_v53 = vunpack.c.h.bf16 %v874_v25  ;;  %v1199_v54 = vadd.f32 %v1071_v40, %v744_v46  ;;  %v1072_v55 = vmul.f32 %v1772_v11, %v943_v48 }
 0x11b   :  { %v290_v56 = vmul.f32 %v1768_v1, %v161_v49  ;;  %v745_v58 = vadd.f32 %v617_v51, %v292_v47  ;;  %v615_v59 = vmul.f32 %v1770_v6, %v486_v52  ;;  %v414_v8 = vmul.f32 %v413_v5, %v1768_v1 }
 0x11c   :  { %v1197_v57 = vadd.f32 %v1069_v44, %v742_v50  ;;  %v1070_v60 = vmul.f32 %v1772_v11, %v941_v53  ;;  %1471 = vmatpush.xpose.msrb.mxu2 %v1199_v54  ;;  %v868_v9 = vmul.f32 %v867_v7, %v1770_v6  ;;  %v1550_v13 = vunpack.c.h.bf16 %v1548_v10 }
 0x11d   :  { %v1200_v62 = vadd.f32 %v1072_v55, %v745_v58  ;;  %v743_v63 = vadd.f32 %v615_v59, %v290_v56  ;;  %v1323_v15 = vmul.f32 %v1322_v12, %v1772_v11  ;;  %v1549_v16 = vunpack.c.l.bf16 %v1548_v10 }
 0x11e   :  { %1431 = vmatpush.xpose.msrb.mxu0 %v1197_v57  ;;  %v869_v14 = vadd.f32 %v868_v9, %v414_v8 }
 0x11f   :  { %1491 = vmatpush.xpose.msrb.mxu3 %v1200_v62  ;;  %1472 = vmatmul.f32.vlgmr.msrb.gmra.mxu2 %v1331_v61  ;;  %v1198_v2 = vadd.f32 %v1070_v60, %v743_v63 }
 0x120   :  { %v1324_v18 = vadd.f32 %v1323_v15, %v869_v14 }
 0x121   :  { %1432 = vmatmul.f32.vlgmr.msrb.gmra.mxu0 %v1329_v0  ;;  %1451 = vmatpush.xpose.msrb.mxu1 %v1198_v2 }
 0x122   :  { %1492 = vmatmul.f32.vlgmr.msrb.gmra.mxu3 %v1332_v3  ;;  %1518 = vmatpush.xpose.msra.mxu0 %v1550_v13  ;;  %v1334_v19 = vperm.slane %v1324_v18, 0 }
 0x124   :  { %1452 = vmatmul.f32.vlgmr.msrb.gmra.mxu1 %v1330_v4 }
 0x126   :  { %1519 = vmatpush.xpose.msra.mxu0 %v1549_v16 }
 0x169   :  { %v1353_v17 = vpop.f32.mrf.mxu0 }
 0x16a   :  { %v1354_v20 = vadd.f32 %v1353_v17, %v1334_v19 }
 0x16b   :  { %v1373_v21 = vpop.f32.mrf.mxu1 }
 0x16c   :  { %v1374_v22 = vadd.f32 %v1373_v21, %v1354_v20 }
 0x16d   :  { %v1393_v23 = vpop.f32.mrf.mxu2 }
 0x16e   :  { %v1394_v24 = vadd.f32 %v1393_v23, %v1374_v22 }
 0x170   :  { %v1413_v1 = vpop.f32.mrf.mxu3 }
 0x171   :  { %v1414_v25 = vadd.f32 %v1413_v1, %v1394_v24 }
 0x19e   :  { %v1433_v6 = vpop.f32.mrf.mxu0 }
 0x19f   :  { %v1434_v26 = vadd.f32 %v1433_v6, %v1414_v25 }
 0x1a1   :  { %v1453_v27 = vpop.f32.mrf.mxu1 }
 0x1a2   :  { %v1454_v28 = vadd.f32 %v1453_v27, %v1434_v26  ;;  %v1473_v29 = vpop.f32.mrf.mxu2 }
 0x1a4   :  { %v1474_v30 = vadd.f32 %v1473_v29, %v1454_v28 }
 0x1a5   :  { %v1493_v31 = vpop.f32.mrf.mxu3 }
 0x1a6   :  { %v1494_v11 = vadd.f32 %v1493_v31, %v1474_v30 }
 0x1a8   :  { %1520 = vmatmul.f32.vlgmr.msra.gmra.mxu0 %v1494_v11 }
 0x225   :  { %v1521_v34 = vpop.f32.mrf.mxu0 }
 0x226   :  { %v1522_v35 = vadd.f32 %v1563_v32, %v1521_v34 }
 0x228   :  { %1525 = vst.msk [vmem:[#allocation12] sm:$0xff] %vm1524_vm0, %v1522_v35 }
 0x229   :  { %1536 = dma.vmem_to_hbm [thread:$0]  %s1532_s28, 128, %s1534_s0, [#allocation6]  }
 0x22a   :  { %1704 = dma.done.wait [#allocation6], 128  }
 0x22b   :  { %1705 = vsyncadd [#allocation6], 4294967168 }
 0x22c   :  { %1541 = vsyncpa [#allocation5], 1 }
 0x22d   :  { %1542 = vsyncpa [#allocation8], 1 }
 0x22e   :  { %1543 = vsyncpa [#allocation11], 1 }
 0x22f   :  { %1544 = vsyncpa [#allocation6], 1 }

</bundles_post_ra>
